<compile_context>
chip_gen: v7x
topology: tpu7x:2x2x1
jax: 0.10.0
libtpu: 0.0.40
codegen_flags: <defaults>
</compile_context>

<pallas_src>
import jax
import jax.numpy as jnp
from jax.experimental import pallas as pl
from jax.experimental.pallas import tpu as pltpu


def _unet_fused_kernel(x_ref, msk_ref, w1_ref, b1_ref, w2_ref, b2_ref, o_ref,
                       xbuf, p1s, hbuf, p2s):
    # x_ref  : (1, Cin, HW)          one image, channels-first, flat spatial
    # msk_ref: (2, HW)               column masks: row0 -> dx=-1, row1 -> dx=+1
    # w1_ref : (Cmid, 9*Cin)         down-conv weight, column = tap*Cin + c
    # b1_ref : (Cmid, 1)
    # w2_ref : (Cout, 9*Cmid)        up-conv (flipped) weight, col = tap*Cmid+c
    # b2_ref : (Cout, 1)
    # o_ref  : (1, Cout, HW)         lane-dense output (HW on lanes)
    # xbuf   : (Cin,  HW + 2*(W+1))  margin-extended flat input    (VMEM)
    # p1s    : (9*Cin,  HW)          im2col patch, conv 1          (VMEM)
    # hbuf   : (Cmid, HW + 2*(W+1))  margin-extended intermediate  (VMEM)
    # p2s    : (9*Cmid, HW)          im2col patch, conv 2          (VMEM)
    Cin = x_ref.shape[1]
    HW = x_ref.shape[2]
    Cmid = hbuf.shape[0]
    off = (xbuf.shape[1] - HW) // 2          # margin length = W + 1 (static)
    W = off - 1

    m_left = msk_ref[0:1, :]                 # source col j-1 >= 0
    m_right = msk_ref[1:2, :]                # source col j+1 <  W

    def im2col(src_buf, patch, C):
        # Tap (kh, kw) of a 3x3 / pad-1 window is a static lane-offset slice
        # of the margin-extended flat buffer: flat shift s = (kh-1)*W + (kw-1).
        # Out-of-image ROWS land in the zeroed margins; out-of-image COLUMNS
        # (row wrap-around of the flat layout) are killed by the column masks.
        for kh in range(3):
            for kw in range(3):
                tap = kh * 3 + kw
                s = (kh - 1) * W + (kw - 1)
                t = src_buf[:, off + s: off + s + HW]      # (C, HW) lane-dense
                if kw == 0:
                    t = t * m_left
                elif kw == 2:
                    t = t * m_right
                patch[tap * C:(tap + 1) * C, :] = t

    # ---- stage the input: zero only the margins (interior fully overwritten)
    xbuf[:, 0:off] = jnp.zeros((Cin, off), jnp.float32)
    xbuf[:, off + HW:off + HW + off] = jnp.zeros((Cin, off), jnp.float32)
    xbuf[:, off:off + HW] = x_ref[0].astype(jnp.float32)

    # ---- conv1 (Conv2d 3->64): im2col + ONE K=9*Cin MXU matmul --------------
    im2col(xbuf, p1s, Cin)
    h = jnp.dot(w1_ref[...], p1s[...],
                preferred_element_type=jnp.float32) + b1_ref[...]   # (Cmid, HW)

    # ---- fused: the 64-channel intermediate never leaves VMEM ---------------
    hbuf[:, 0:off] = jnp.zeros((Cmid, off), jnp.float32)
    hbuf[:, off + HW:off + HW + off] = jnp.zeros((Cmid, off), jnp.float32)
    hbuf[:, off:off + HW] = h

    # ---- conv2 (ConvTranspose2d 64->3 == correlation w/ flipped kernel) -----
    im2col(hbuf, p2s, Cmid)
    y = jnp.dot(w2_ref[...], p2s[...],
                preferred_element_type=jnp.float32) + b2_ref[...]   # (Cout, HW)

    o_ref[0] = y.astype(o_ref.dtype)


def init_unet_params(key):
    """Deterministic synthetic parameters matching the PyTorch module shapes."""
    k1, k2, k3, k4 = jax.random.split(key, 4)
    # nn.Conv2d(3, 64, 3): weight OIHW (64, 3, 3, 3), bias (64,)
    w_down = jax.random.normal(k1, (64, 3, 3, 3), jnp.float32) * 0.1
    b_down = jax.random.normal(k2, (64,), jnp.float32) * 0.1
    # nn.ConvTranspose2d(64, 3, 3): weight IOHW (64, 3, 3, 3), bias (3,)
    w_up = jax.random.normal(k3, (64, 3, 3, 3), jnp.float32) * 0.1
    b_up = jax.random.normal(k4, (3,), jnp.float32) * 0.1
    return {"w_down": w_down, "b_down": b_down, "w_up": w_up, "b_up": b_up}


def unet_forward(params, x_nchw):
    """Forward pass equivalent to the PyTorch UNet. Input/output are NCHW."""
    N, Cin, H, W = x_nchw.shape
    Cmid = params["w_down"].shape[0]                  # 64
    Cout = params["w_up"].shape[1]                    # 3
    HW = H * W
    margin = W + 1

    # Channels-first + flat spatial: pure reshape, NCHW is already channel-major.
    x_flat = x_nchw.reshape(N, Cin, HW)

    # Conv2d weight: OIHW -> (O, KH, KW, I) -> (O, 9*I); column order is
    # tap-major / in-channel-minor, matching the kernel's im2col patch rows.
    w1 = jnp.transpose(params["w_down"], (0, 2, 3, 1)).reshape(Cmid, 9 * Cin)
    b1 = params["b_down"].reshape(Cmid, 1)

    # ConvTranspose2d(stride=1, pad=1) == correlation with the spatially
    # flipped, in/out-swapped kernel: IOHW -> flip(H,W) -> (O, KH, KW, I).
    w2 = jnp.transpose(jnp.flip(params["w_up"], axis=(2, 3)),
                       (1, 2, 3, 0)).reshape(Cout, 9 * Cmid)
    b2 = params["b_up"].reshape(Cout, 1)

    # Column-validity masks for the horizontal taps (dx = -1 / dx = +1): row
    # wrap-around of the flat layout is killed here; out-of-range rows land in
    # the kernel's zeroed margins.
    col = jnp.arange(HW, dtype=jnp.int32) % W
    col_masks = jnp.stack([(col > 0), (col < W - 1)]).astype(x_nchw.dtype)

    y = pl.pallas_call(
        _unet_fused_kernel,
        out_shape=jax.ShapeDtypeStruct((N, Cout, HW), x_nchw.dtype),
        grid=(N,),
        in_specs=[
            pl.BlockSpec((1, Cin, HW), lambda n: (n, 0, 0)),
            pl.BlockSpec((2, HW), lambda n: (0, 0)),
            pl.BlockSpec((Cmid, 9 * Cin), lambda n: (0, 0)),
            pl.BlockSpec((Cmid, 1), lambda n: (0, 0)),
            pl.BlockSpec((Cout, 9 * Cmid), lambda n: (0, 0)),
            pl.BlockSpec((Cout, 1), lambda n: (0, 0)),
        ],
        out_specs=pl.BlockSpec((1, Cout, HW), lambda n: (n, 0, 0)),
        scratch_shapes=[
            pltpu.VMEM((Cin, HW + 2 * margin), jnp.float32),   # margin input
            pltpu.VMEM((9 * Cin, HW), jnp.float32),            # im2col patch 1
            pltpu.VMEM((Cmid, HW + 2 * margin), jnp.float32),  # margin interm.
            pltpu.VMEM((9 * Cmid, HW), jnp.float32),           # im2col patch 2
        ],
        compiler_params=pltpu.CompilerParams(
            # 2 images -> both TensorCores on v7x; on single-TC v5e/v6e this is
            # just a 2-step serial loop (~0.35us/step, negligible).
            dimension_semantics=("parallel",),
            # All scratch <1 MiB; 32 MiB is safe on every generation.  For a
            # future row-tiled large-image path, re-derive the tile from the
            # per-generation VMEM (64 MiB/TC on v7x vs 128 MiB on v5e/v6e) and
            # raise this limit accordingly.
            vmem_limit_bytes=32 * 1024 * 1024,
        ),
    )(x_flat, col_masks, w1, b1, w2, b2)

    return y.reshape(N, Cout, H, W)


def unet_reference(params, x_nchw):
    """Pure-XLA reference (independent of the Pallas path) for validation."""
    h = jax.lax.conv_general_dilated(
        x_nchw, params["w_down"], (1, 1), ((1, 1), (1, 1)),
        dimension_numbers=("NCHW", "OIHW", "NCHW"),
        precision=jax.lax.Precision.HIGHEST)
    h = h + params["b_down"][None, :, None, None]
    # ConvTranspose2d(stride=1, pad=1) == correlation with flipped/swapped kernel.
    w2 = jnp.transpose(jnp.flip(params["w_up"], axis=(2, 3)), (1, 0, 2, 3))
    y = jax.lax.conv_general_dilated(
        h, w2, (1, 1), ((1, 1), (1, 1)),
        dimension_numbers=("NCHW", "OIHW", "NCHW"),
        precision=jax.lax.Precision.HIGHEST)
    return y + params["b_up"][None, :, None, None]


if __name__ == "__main__":
    key = jax.random.PRNGKey(0)
    pkey, xkey = jax.random.split(key)
    params = init_unet_params(pkey)

    # Small example input consistent with the module: NCHW, 3 input channels.
    x = jax.random.normal(xkey, (2, 3, 16, 16), jnp.float32)

    out = jax.jit(unet_forward)(params, x)
    jax.block_until_ready(out)
    assert out.shape == (2, 3, 16, 16)

    ref = unet_reference(params, x)
    err = float(jnp.max(jnp.abs(out - ref)))
    assert err < 1e-3, f"max abs error vs XLA reference: {err}"
    print("KERNEL_OK")
</pallas_src>

<mosaic_0001>
module attributes {stable_mosaic.version = 11 : i64} {
  func.func @_unet_fused_kernel(%arg0: i32, %arg1: memref<1x3x256xf32, #tpu.memory_space<vmem>>, %arg2: memref<2x256xf32, #tpu.memory_space<vmem>>, %arg3: memref<64x27xf32, #tpu.memory_space<vmem>>, %arg4: memref<64x1xf32, #tpu.memory_space<vmem>>, %arg5: memref<3x576xf32, #tpu.memory_space<vmem>>, %arg6: memref<3x1xf32, #tpu.memory_space<vmem>>, %arg7: memref<1x3x256xf32, #tpu.memory_space<vmem>>, %arg8: memref<3x290xf32, #tpu.memory_space<vmem>>, %arg9: memref<27x256xf32, #tpu.memory_space<vmem>>, %arg10: memref<64x290xf32, #tpu.memory_space<vmem>>, %arg11: memref<576x256xf32, #tpu.memory_space<vmem>>) attributes {dimension_semantics = [#tpu.dimension_semantics<parallel>], iteration_bounds = array<i64: 2>, scalar_prefetch = 0 : i64, scratch_operands = 4 : i64, tpu.core_type = #tpu.core_type<tc>, window_params = [{transform_indices = @transform_0, window_bounds = array<i64: 1, 3, 256>}, {pipeline_mode = #tpu.pipeline_mode<synchronous>, transform_indices = @transform_1, window_bounds = array<i64: 2, 256>}, {pipeline_mode = #tpu.pipeline_mode<synchronous>, transform_indices = @transform_2, window_bounds = array<i64: 64, 27>}, {pipeline_mode = #tpu.pipeline_mode<synchronous>, transform_indices = @transform_3, window_bounds = array<i64: 64, 1>}, {pipeline_mode = #tpu.pipeline_mode<synchronous>, transform_indices = @transform_4, window_bounds = array<i64: 3, 576>}, {pipeline_mode = #tpu.pipeline_mode<synchronous>, transform_indices = @transform_5, window_bounds = array<i64: 3, 1>}, {transform_indices = @transform_6, window_bounds = array<i64: 1, 3, 256>}]} {
    %c0 = arith.constant 0 : index
    %c0_0 = arith.constant 0 : index
    %0 = vector.load %arg2[%c0, %c0_0] : memref<2x256xf32, #tpu.memory_space<vmem>>, vector<1x256xf32>
    %c1 = arith.constant 1 : index
    %c0_1 = arith.constant 0 : index
    %1 = vector.load %arg2[%c1, %c0_1] : memref<2x256xf32, #tpu.memory_space<vmem>>, vector<1x256xf32>
    %cst = arith.constant 0.000000e+00 : f32
    %2 = vector.broadcast %cst : f32 to vector<3x17xf32>
    %c0_2 = arith.constant 0 : index
    %c0_3 = arith.constant 0 : index
    %3 = vector.load %arg8[%c0_2, %c0_3] : memref<3x290xf32, #tpu.memory_space<vmem>>, vector<3x17xf32>
    tpu.vector_store %arg8[%c0_2, %c0_3], %2 {strides = array<i32>} : memref<3x290xf32, #tpu.memory_space<vmem>>, vector<3x17xf32>,
    %cst_4 = arith.constant 0.000000e+00 : f32
    %4 = vector.broadcast %cst_4 : f32 to vector<3x17xf32>
    %c0_5 = arith.constant 0 : index
    %c273 = arith.constant 273 : index
    %5 = vector.load %arg8[%c0_5, %c273] : memref<3x290xf32, #tpu.memory_space<vmem>>, vector<3x17xf32>
    tpu.vector_store %arg8[%c0_5, %c273], %4 {strides = array<i32>} : memref<3x290xf32, #tpu.memory_space<vmem>>, vector<3x17xf32>,
    %c0_6 = arith.constant 0 : index
    %c0_7 = arith.constant 0 : index
    %c0_8 = arith.constant 0 : index
    %6 = vector.load %arg1[%c0_6, %c0_7, %c0_8] : memref<1x3x256xf32, #tpu.memory_space<vmem>>, vector<1x3x256xf32>
    %7 = vector.shape_cast %6 : vector<1x3x256xf32> to vector<3x256xf32>
    %c0_9 = arith.constant 0 : index
    %c17 = arith.constant 17 : index
    %8 = vector.load %arg8[%c0_9, %c17] : memref<3x290xf32, #tpu.memory_space<vmem>>, vector<3x256xf32>
    tpu.vector_store %arg8[%c0_9, %c17], %7 {strides = array<i32>} : memref<3x290xf32, #tpu.memory_space<vmem>>, vector<3x256xf32>,
    %c0_10 = arith.constant 0 : index
    %c0_11 = arith.constant 0 : index
    %9 = vector.load %arg8[%c0_10, %c0_11] : memref<3x290xf32, #tpu.memory_space<vmem>>, vector<3x256xf32>
    %10 = vector.broadcast %0 : vector<1x256xf32> to vector<3x256xf32>
    %11 = arith.mulf %9, %10 : vector<3x256xf32>
    %c0_12 = arith.constant 0 : index
    %c0_13 = arith.constant 0 : index
    %12 = vector.load %arg9[%c0_12, %c0_13] : memref<27x256xf32, #tpu.memory_space<vmem>>, vector<3x256xf32>
    tpu.vector_store %arg9[%c0_12, %c0_13], %11 {strides = array<i32>} : memref<27x256xf32, #tpu.memory_space<vmem>>, vector<3x256xf32>,
    %c0_14 = arith.constant 0 : index
    %c1_15 = arith.constant 1 : index
    %13 = vector.load %arg8[%c0_14, %c1_15] : memref<3x290xf32, #tpu.memory_space<vmem>>, vector<3x256xf32>
    %c3 = arith.constant 3 : index
    %c0_16 = arith.constant 0 : index
    %14 = vector.load %arg9[%c3, %c0_16] : memref<27x256xf32, #tpu.memory_space<vmem>>, vector<3x256xf32>
    tpu.vector_store %arg9[%c3, %c0_16], %13 {strides = array<i32>} : memref<27x256xf32, #tpu.memory_space<vmem>>, vector<3x256xf32>,
    %c0_17 = arith.constant 0 : index
    %c2 = arith.constant 2 : index
    %15 = vector.load %arg8[%c0_17, %c2] : memref<3x290xf32, #tpu.memory_space<vmem>>, vector<3x256xf32>
    %16 = vector.broadcast %1 : vector<1x256xf32> to vector<3x256xf32>
    %17 = arith.mulf %15, %16 : vector<3x256xf32>
    %c6 = arith.constant 6 : index
    %c0_18 = arith.constant 0 : index
    %18 = vector.load %arg9[%c6, %c0_18] : memref<27x256xf32, #tpu.memory_space<vmem>>, vector<3x256xf32>
    tpu.vector_store %arg9[%c6, %c0_18], %17 {strides = array<i32>} : memref<27x256xf32, #tpu.memory_space<vmem>>, vector<3x256xf32>,
    %c0_19 = arith.constant 0 : index
    %c16 = arith.constant 16 : index
    %19 = vector.load %arg8[%c0_19, %c16] : memref<3x290xf32, #tpu.memory_space<vmem>>, vector<3x256xf32>
    %20 = vector.broadcast %0 : vector<1x256xf32> to vector<3x256xf32>
    %21 = arith.mulf %19, %20 : vector<3x256xf32>
    %c9 = arith.constant 9 : index
    %c0_20 = arith.constant 0 : index
    %22 = vector.load %arg9[%c9, %c0_20] : memref<27x256xf32, #tpu.memory_space<vmem>>, vector<3x256xf32>
    tpu.vector_store %arg9[%c9, %c0_20], %21 {strides = array<i32>} : memref<27x256xf32, #tpu.memory_space<vmem>>, vector<3x256xf32>,
    %c0_21 = arith.constant 0 : index
    %c17_22 = arith.constant 17 : index
    %23 = vector.load %arg8[%c0_21, %c17_22] : memref<3x290xf32, #tpu.memory_space<vmem>>, vector<3x256xf32>
    %c12 = arith.constant 12 : index
    %c0_23 = arith.constant 0 : index
    %24 = vector.load %arg9[%c12, %c0_23] : memref<27x256xf32, #tpu.memory_space<vmem>>, vector<3x256xf32>
    tpu.vector_store %arg9[%c12, %c0_23], %23 {strides = array<i32>} : memref<27x256xf32, #tpu.memory_space<vmem>>, vector<3x256xf32>,
    %c0_24 = arith.constant 0 : index
    %c18 = arith.constant 18 : index
    %25 = vector.load %arg8[%c0_24, %c18] : memref<3x290xf32, #tpu.memory_space<vmem>>, vector<3x256xf32>
    %26 = vector.broadcast %1 : vector<1x256xf32> to vector<3x256xf32>
    %27 = arith.mulf %25, %26 : vector<3x256xf32>
    %c15 = arith.constant 15 : index
    %c0_25 = arith.constant 0 : index
    %28 = vector.load %arg9[%c15, %c0_25] : memref<27x256xf32, #tpu.memory_space<vmem>>, vector<3x256xf32>
    tpu.vector_store %arg9[%c15, %c0_25], %27 {strides = array<i32>} : memref<27x256xf32, #tpu.memory_space<vmem>>, vector<3x256xf32>,
    %c0_26 = arith.constant 0 : index
    %c32 = arith.constant 32 : index
    %29 = vector.load %arg8[%c0_26, %c32] : memref<3x290xf32, #tpu.memory_space<vmem>>, vector<3x256xf32>
    %30 = vector.broadcast %0 : vector<1x256xf32> to vector<3x256xf32>
    %31 = arith.mulf %29, %30 : vector<3x256xf32>
    %c18_27 = arith.constant 18 : index
    %c0_28 = arith.constant 0 : index
    %32 = vector.load %arg9[%c18_27, %c0_28] : memref<27x256xf32, #tpu.memory_space<vmem>>, vector<3x256xf32>
    tpu.vector_store %arg9[%c18_27, %c0_28], %31 {strides = array<i32>} : memref<27x256xf32, #tpu.memory_space<vmem>>, vector<3x256xf32>,
    %c0_29 = arith.constant 0 : index
    %c33 = arith.constant 33 : index
    %33 = vector.load %arg8[%c0_29, %c33] : memref<3x290xf32, #tpu.memory_space<vmem>>, vector<3x256xf32>
    %c21 = arith.constant 21 : index
    %c0_30 = arith.constant 0 : index
    %34 = vector.load %arg9[%c21, %c0_30] : memref<27x256xf32, #tpu.memory_space<vmem>>, vector<3x256xf32>
    tpu.vector_store %arg9[%c21, %c0_30], %33 {strides = array<i32>} : memref<27x256xf32, #tpu.memory_space<vmem>>, vector<3x256xf32>,
    %c0_31 = arith.constant 0 : index
    %c34 = arith.constant 34 : index
    %35 = vector.load %arg8[%c0_31, %c34] : memref<3x290xf32, #tpu.memory_space<vmem>>, vector<3x256xf32>
    %36 = vector.broadcast %1 : vector<1x256xf32> to vector<3x256xf32>
    %37 = arith.mulf %35, %36 : vector<3x256xf32>
    %c24 = arith.constant 24 : index
    %c0_32 = arith.constant 0 : index
    %38 = vector.load %arg9[%c24, %c0_32] : memref<27x256xf32, #tpu.memory_space<vmem>>, vector<3x256xf32>
    tpu.vector_store %arg9[%c24, %c0_32], %37 {strides = array<i32>} : memref<27x256xf32, #tpu.memory_space<vmem>>, vector<3x256xf32>,
    %c0_33 = arith.constant 0 : index
    %c0_34 = arith.constant 0 : index
    %39 = vector.load %arg3[%c0_33, %c0_34] : memref<64x27xf32, #tpu.memory_space<vmem>>, vector<64x27xf32>
    %c0_35 = arith.constant 0 : index
    %c0_36 = arith.constant 0 : index
    %40 = vector.load %arg9[%c0_35, %c0_36] : memref<27x256xf32, #tpu.memory_space<vmem>>, vector<27x256xf32>
    %cst_37 = arith.constant dense<0.000000e+00> : vector<64x256xf32>
    %41 = tpu.matmul %39, %40, %cst_37 {dimension_numbers = #tpu.dot_dimension_numbers<[1], [0], [0], [1], [0, 0, 1, 1], [], []>} : vector<64x27xf32>, vector<27x256xf32>, vector<64x256xf32> -> vector<64x256xf32>
    %c0_38 = arith.constant 0 : index
    %c0_39 = arith.constant 0 : index
    %42 = vector.load %arg4[%c0_38, %c0_39] : memref<64x1xf32, #tpu.memory_space<vmem>>, vector<64x1xf32>
    %43 = vector.broadcast %42 : vector<64x1xf32> to vector<64x256xf32>
    %44 = arith.addf %41, %43 : vector<64x256xf32>
    %cst_40 = arith.constant 0.000000e+00 : f32
    %45 = vector.broadcast %cst_40 : f32 to vector<64x17xf32>
    %c0_41 = arith.constant 0 : index
    %c0_42 = arith.constant 0 : index
    %46 = vector.load %arg10[%c0_41, %c0_42] : memref<64x290xf32, #tpu.memory_space<vmem>>, vector<64x17xf32>
    tpu.vector_store %arg10[%c0_41, %c0_42], %45 {strides = array<i32>} : memref<64x290xf32, #tpu.memory_space<vmem>>, vector<64x17xf32>,
    %cst_43 = arith.constant 0.000000e+00 : f32
    %47 = vector.broadcast %cst_43 : f32 to vector<64x17xf32>
    %c0_44 = arith.constant 0 : index
    %c273_45 = arith.constant 273 : index
    %48 = vector.load %arg10[%c0_44, %c273_45] : memref<64x290xf32, #tpu.memory_space<vmem>>, vector<64x17xf32>
    tpu.vector_store %arg10[%c0_44, %c273_45], %47 {strides = array<i32>} : memref<64x290xf32, #tpu.memory_space<vmem>>, vector<64x17xf32>,
    %c0_46 = arith.constant 0 : index
    %c17_47 = arith.constant 17 : index
    %49 = vector.load %arg10[%c0_46, %c17_47] : memref<64x290xf32, #tpu.memory_space<vmem>>, vector<64x256xf32>
    tpu.vector_store %arg10[%c0_46, %c17_47], %44 {strides = array<i32>} : memref<64x290xf32, #tpu.memory_space<vmem>>, vector<64x256xf32>,
    %c0_48 = arith.constant 0 : index
    %c0_49 = arith.constant 0 : index
    %50 = vector.load %arg10[%c0_48, %c0_49] : memref<64x290xf32, #tpu.memory_space<vmem>>, vector<64x256xf32>
    %51 = vector.broadcast %0 : vector<1x256xf32> to vector<64x256xf32>
    %52 = arith.mulf %50, %51 : vector<64x256xf32>
    %c0_50 = arith.constant 0 : index
    %c0_51 = arith.constant 0 : index
    %53 = vector.load %arg11[%c0_50, %c0_51] : memref<576x256xf32, #tpu.memory_space<vmem>>, vector<64x256xf32>
    tpu.vector_store %arg11[%c0_50, %c0_51], %52 {strides = array<i32>} : memref<576x256xf32, #tpu.memory_space<vmem>>, vector<64x256xf32>,
    %c0_52 = arith.constant 0 : index
    %c1_53 = arith.constant 1 : index
    %54 = vector.load %arg10[%c0_52, %c1_53] : memref<64x290xf32, #tpu.memory_space<vmem>>, vector<64x256xf32>
    %c64 = arith.constant 64 : index
    %c0_54 = arith.constant 0 : index
    %55 = vector.load %arg11[%c64, %c0_54] : memref<576x256xf32, #tpu.memory_space<vmem>>, vector<64x256xf32>
    tpu.vector_store %arg11[%c64, %c0_54], %54 {strides = array<i32>} : memref<576x256xf32, #tpu.memory_space<vmem>>, vector<64x256xf32>,
    %c0_55 = arith.constant 0 : index
    %c2_56 = arith.constant 2 : index
    %56 = vector.load %arg10[%c0_55, %c2_56] : memref<64x290xf32, #tpu.memory_space<vmem>>, vector<64x256xf32>
    %57 = vector.broadcast %1 : vector<1x256xf32> to vector<64x256xf32>
    %58 = arith.mulf %56, %57 : vector<64x256xf32>
    %c128 = arith.constant 128 : index
    %c0_57 = arith.constant 0 : index
    %59 = vector.load %arg11[%c128, %c0_57] : memref<576x256xf32, #tpu.memory_space<vmem>>, vector<64x256xf32>
    tpu.vector_store %arg11[%c128, %c0_57], %58 {strides = array<i32>} : memref<576x256xf32, #tpu.memory_space<vmem>>, vector<64x256xf32>,
    %c0_58 = arith.constant 0 : index
    %c16_59 = arith.constant 16 : index
    %60 = vector.load %arg10[%c0_58, %c16_59] : memref<64x290xf32, #tpu.memory_space<vmem>>, vector<64x256xf32>
    %61 = vector.broadcast %0 : vector<1x256xf32> to vector<64x256xf32>
    %62 = arith.mulf %60, %61 : vector<64x256xf32>
    %c192 = arith.constant 192 : index
    %c0_60 = arith.constant 0 : index
    %63 = vector.load %arg11[%c192, %c0_60] : memref<576x256xf32, #tpu.memory_space<vmem>>, vector<64x256xf32>
    tpu.vector_store %arg11[%c192, %c0_60], %62 {strides = array<i32>} : memref<576x256xf32, #tpu.memory_space<vmem>>, vector<64x256xf32>,
    %c0_61 = arith.constant 0 : index
    %c17_62 = arith.constant 17 : index
    %64 = vector.load %arg10[%c0_61, %c17_62] : memref<64x290xf32, #tpu.memory_space<vmem>>, vector<64x256xf32>
    %c256 = arith.constant 256 : index
    %c0_63 = arith.constant 0 : index
    %65 = vector.load %arg11[%c256, %c0_63] : memref<576x256xf32, #tpu.memory_space<vmem>>, vector<64x256xf32>
    tpu.vector_store %arg11[%c256, %c0_63], %64 {strides = array<i32>} : memref<576x256xf32, #tpu.memory_space<vmem>>, vector<64x256xf32>,
    %c0_64 = arith.constant 0 : index
    %c18_65 = arith.constant 18 : index
    %66 = vector.load %arg10[%c0_64, %c18_65] : memref<64x290xf32, #tpu.memory_space<vmem>>, vector<64x256xf32>
    %67 = vector.broadcast %1 : vector<1x256xf32> to vector<64x256xf32>
    %68 = arith.mulf %66, %67 : vector<64x256xf32>
    %c320 = arith.constant 320 : index
    %c0_66 = arith.constant 0 : index
    %69 = vector.load %arg11[%c320, %c0_66] : memref<576x256xf32, #tpu.memory_space<vmem>>, vector<64x256xf32>
    tpu.vector_store %arg11[%c320, %c0_66], %68 {strides = array<i32>} : memref<576x256xf32, #tpu.memory_space<vmem>>, vector<64x256xf32>,
    %c0_67 = arith.constant 0 : index
    %c32_68 = arith.constant 32 : index
    %70 = vector.load %arg10[%c0_67, %c32_68] : memref<64x290xf32, #tpu.memory_space<vmem>>, vector<64x256xf32>
    %71 = vector.broadcast %0 : vector<1x256xf32> to vector<64x256xf32>
    %72 = arith.mulf %70, %71 : vector<64x256xf32>
    %c384 = arith.constant 384 : index
    %c0_69 = arith.constant 0 : index
    %73 = vector.load %arg11[%c384, %c0_69] : memref<576x256xf32, #tpu.memory_space<vmem>>, vector<64x256xf32>
    tpu.vector_store %arg11[%c384, %c0_69], %72 {strides = array<i32>} : memref<576x256xf32, #tpu.memory_space<vmem>>, vector<64x256xf32>,
    %c0_70 = arith.constant 0 : index
    %c33_71 = arith.constant 33 : index
    %74 = vector.load %arg10[%c0_70, %c33_71] : memref<64x290xf32, #tpu.memory_space<vmem>>, vector<64x256xf32>
    %c448 = arith.constant 448 : index
    %c0_72 = arith.constant 0 : index
    %75 = vector.load %arg11[%c448, %c0_72] : memref<576x256xf32, #tpu.memory_space<vmem>>, vector<64x256xf32>
    tpu.vector_store %arg11[%c448, %c0_72], %74 {strides = array<i32>} : memref<576x256xf32, #tpu.memory_space<vmem>>, vector<64x256xf32>,
    %c0_73 = arith.constant 0 : index
    %c34_74 = arith.constant 34 : index
    %76 = vector.load %arg10[%c0_73, %c34_74] : memref<64x290xf32, #tpu.memory_space<vmem>>, vector<64x256xf32>
    %77 = vector.broadcast %1 : vector<1x256xf32> to vector<64x256xf32>
    %78 = arith.mulf %76, %77 : vector<64x256xf32>
    %c512 = arith.constant 512 : index
    %c0_75 = arith.constant 0 : index
    %79 = vector.load %arg11[%c512, %c0_75] : memref<576x256xf32, #tpu.memory_space<vmem>>, vector<64x256xf32>
    tpu.vector_store %arg11[%c512, %c0_75], %78 {strides = array<i32>} : memref<576x256xf32, #tpu.memory_space<vmem>>, vector<64x256xf32>,
    %c0_76 = arith.constant 0 : index
    %c0_77 = arith.constant 0 : index
    %80 = vector.load %arg5[%c0_76, %c0_77] : memref<3x576xf32, #tpu.memory_space<vmem>>, vector<3x576xf32>
    %c0_78 = arith.constant 0 : index
    %c0_79 = arith.constant 0 : index
    %81 = vector.load %arg11[%c0_78, %c0_79] : memref<576x256xf32, #tpu.memory_space<vmem>>, vector<576x256xf32>
    %cst_80 = arith.constant dense<0.000000e+00> : vector<3x256xf32>
    %82 = tpu.matmul %80, %81, %cst_80 {dimension_numbers = #tpu.dot_dimension_numbers<[1], [0], [0], [1], [0, 0, 1, 1], [], []>} : vector<3x576xf32>, vector<576x256xf32>, vector<3x256xf32> -> vector<3x256xf32>
    %c0_81 = arith.constant 0 : index
    %c0_82 = arith.constant 0 : index
    %83 = vector.load %arg6[%c0_81, %c0_82] : memref<3x1xf32, #tpu.memory_space<vmem>>, vector<3x1xf32>
    %84 = vector.broadcast %83 : vector<3x1xf32> to vector<3x256xf32>
    %85 = arith.addf %82, %84 : vector<3x256xf32>
    %c0_83 = arith.constant 0 : index
    %c0_84 = arith.constant 0 : index
    %c0_85 = arith.constant 0 : index
    %86 = vector.load %arg7[%c0_83, %c0_84, %c0_85] : memref<1x3x256xf32, #tpu.memory_space<vmem>>, vector<1x3x256xf32>
    %87 = vector.shape_cast %86 : vector<1x3x256xf32> to vector<3x256xf32>
    %88 = vector.shape_cast %85 : vector<3x256xf32> to vector<1x3x256xf32>
    tpu.vector_store %arg7[%c0_83, %c0_84, %c0_85], %88 {strides = array<i32>} : memref<1x3x256xf32, #tpu.memory_space<vmem>>, vector<1x3x256xf32>,
    return
  }
  func.func @transform_0(%arg0: i32) -> (i32, i32, i32) {
    %c0_i32 = arith.constant 0 : i32
    %c0_i32_0 = arith.constant 0 : i32
    %c0_i32_1 = arith.constant 0 : i32
    return %arg0, %c0_i32, %c0_i32_0 : i32, i32, i32
  }
  func.func @transform_1(%arg0: i32) -> (i32, i32) {
    %c0_i32 = arith.constant 0 : i32
    %c0_i32_0 = arith.constant 0 : i32
    %c0_i32_1 = arith.constant 0 : i32
    return %c0_i32, %c0_i32_0 : i32, i32
  }
  func.func @transform_2(%arg0: i32) -> (i32, i32) {
    %c0_i32 = arith.constant 0 : i32
    %c0_i32_0 = arith.constant 0 : i32
    %c0_i32_1 = arith.constant 0 : i32
    return %c0_i32, %c0_i32_0 : i32, i32
  }
  func.func @transform_3(%arg0: i32) -> (i32, i32) {
    %c0_i32 = arith.constant 0 : i32
    %c0_i32_0 = arith.constant 0 : i32
    %c0_i32_1 = arith.constant 0 : i32
    return %c0_i32, %c0_i32_0 : i32, i32
  }
  func.func @transform_4(%arg0: i32) -> (i32, i32) {
    %c0_i32 = arith.constant 0 : i32
    %c0_i32_0 = arith.constant 0 : i32
    %c0_i32_1 = arith.constant 0 : i32
    return %c0_i32, %c0_i32_0 : i32, i32
  }
  func.func @transform_5(%arg0: i32) -> (i32, i32) {
    %c0_i32 = arith.constant 0 : i32
    %c0_i32_0 = arith.constant 0 : i32
    %c0_i32_1 = arith.constant 0 : i32
    return %c0_i32, %c0_i32_0 : i32, i32
  }
  func.func @transform_6(%arg0: i32) -> (i32, i32, i32) {
    %c0_i32 = arith.constant 0 : i32
    %c0_i32_0 = arith.constant 0 : i32
    %c0_i32_1 = arith.constant 0 : i32
    return %arg0, %c0_i32, %c0_i32_0 : i32, i32, i32
  }
}

</mosaic_0001>

<bundles_post_ra>
// kernel: unet_forward.1
= control target key start
LH: loop header
LB: loop body
LE: loop exit
PB: predicated region body
PF: predicated region fallthrough
CT: control target
= control target key end

     0   :  { %s3400_s21 = smov 0   ;;  %s4915_s0 = inlined_call_operand.vmem [shape: f32[2,3,256], index: 0, kind: input, shape index: {}]   ;;  %s4916_s1 = inlined_call_operand.vmem [shape: f32[2,256], index: 1, kind: input, shape index: {}]   ;;  %s4917_s2 = inlined_call_operand.vmem [shape: f32[64,27], index: 2, kind: input, shape index: {}]   ;;  %s4918_s3 = inlined_call_operand.vmem [shape: f32[64,1], index: 3, kind: input, shape index: {}]   ;;  %s4919_s4 = inlined_call_operand.vmem [shape: f32[3,576], index: 4, kind: input, shape index: {}]   ;;  %s4920_s5 = inlined_call_operand.vmem [shape: f32[3,1], index: 5, kind: input, shape index: {}]   ;;  %s4921_s6 = inlined_call_operand.vmem [shape: f32[2,3,256], index: 6, kind: output, shape index: {}]  }
   0x1 LB: > { %s2642_s22 = sadd.s32 4294967295, %s3346_s21   ;;  %p2646_p0 = scmp.ge.s32.totalorder %s3346_s21, 1  ;;  %s3346_s21 = sphi %s3400_s21, %s16_s21  }
   0x2   : > { %p212_p1 = scmp.lt.s32.totalorder %s3346_s21, 3 }
   0x4   : > { %p213_p2 = pnand %p2646_p0, %p212_p1 }
   0x6   : > { %216 = sbr.rel (%p213_p2) target bundleno = 1189 (0x4a5), region = 44 }
   0xd   : > { %p242_p3 = scmp.lt.s32.totalorder %s2642_s22, 1  ;;  %v275_v0 = vlaneseq  ;;  %vm255_vm0 = vcmask 133120   ;;  %v4929_v2 = vmov 0.0   ;;  %vm257_vm1 = vcmask 272520   ;;  %s3349_s7 = smov 17  }
   0xe   : > { %256 = vst.msk [vmem:[#allocation2] sm:$0x7] %vm255_vm0, %v4929_v2  ;;  %vm264_vm2 = vcmask 138240   ;;  %673 = vmatprep.mubr.f32.mxu0 %v4929_v2  ;;  %v252_v3 = vld [vmem:[%s4916_s1] ss:$2 sm:$0x3] }
   0xf   : > { %s5058_s22 = smov (!%p242_p3, %s2642_s22), 1  ;;  %v276_v1 = vshrl.u32 %v275_v0, 7  ;;  %v2651_v4 = vld [vmem:[%s4916_s1 + $0x1] ss:$2 sm:$0x3]  ;;  %722 = vst.msk [vmem:[#allocation4] sm:$0xff] %vm264_vm2, %v4929_v2 }
  0x10   : > { %258 = vst.msk [vmem:[#allocation2 + $0x8] sm:$0x7] %vm257_vm1, %v4929_v2  ;;  %s4922_s27 = sshll.u32 %s5058_s22, 3  ;;  %s3350_s8 = smov 16   ;;  %vm268_vm3 = vcmask 1042568   ;;  %vm269_vm4 = vcmask 1046532  }
  0x11   : > { %723 = vst.msk [vmem:[#allocation4 + $0x18] sm:$0xff] %vm264_vm2, %v4929_v2  ;;  %724 = vst.msk [vmem:[#allocation4 + $0x30] sm:$0xff] %vm264_vm2, %v4929_v2  ;;  %v277_v5 = vsub.s32 0, %v276_v1  ;;  %v281_v6 = vsub.s32 1, %v276_v1  ;;  %s246_s30 = scalar_lea.vmem %s4915_s0, %s4922_s27  ;;  %s3351_s9 = smov 2   ;;  %vm359_vm6 = vcmask 130048  }
  0x12   : > { %725 = vst.msk [vmem:[#allocation4 + $0x48] sm:$0xff] %vm264_vm2, %v4929_v2  ;;  %726 = vst.msk [vmem:[#allocation4 + $0x60] sm:$0xff] %vm264_vm2, %v4929_v2  ;;  %v259_v7 = vld [vmem:[%s246_s30] sm:$0x77]  ;;  %s3352_s10 = smov 18   ;;  %s3353_s11 = smov 32  }
  0x13   : > { %727 = vst.msk [vmem:[#allocation4 + $0x78] sm:$0xff] %vm264_vm2, %v4929_v2  ;;  %728 = vst.msk [vmem:[#allocation4 + $0x90] sm:$0xff] %vm264_vm2, %v4929_v2  ;;  %v3442_v8 = vrot.slane %v252_v3, %v277_v5  ;;  %v3444_v9 = vrot.slane %v252_v3, %v281_v6  ;;  %v3446_v10 = vrot.slane %v2651_v4, %v277_v5  ;;  %261 = vrot.lane.b32.xlu0 %v259_v7, %s3349_s7  ;;  %s3354_s12 = smov 34   ;;  %s3355_s13 = smov 111   ;;  %vm327_vm7 = vcmask 15360  }
  0x14   : > { %729 = vst.msk [vmem:[#allocation4 + $0xa8] sm:$0xff] %vm264_vm2, %v4929_v2  ;;  %v3448_v11 = vrot.slane %v2651_v4, %v281_v6  ;;  %vm270_vm5 = vmor %vm269_vm4, %vm268_vm3  ;;  %s3356_s14 = smov 127   ;;  %s3357_s15 = smov 95   ;;  %vm408_vm8 = vcmask 146432   ;;  %vm491_vm9 = vcmask 277504   ;;  %vm440_vm10 = vcmask 261120  }
  0x15   : > { %v283_v12 = vcombine.low %v3442_v8, %v3444_v9  ;;  %s3358_s16 = smov 96   ;;  %s3359_s17 = smov 126   ;;  %vm396_vm11 = vcmask 908288   ;;  %vm305_vm12 = vcmask 1039360   ;;  %vm345_vm13 = vcmask 1031168  }
  0x16   : > { %v323_v13 = vcombine.low %v3446_v10, %v3448_v11  ;;  %s4925_s18 = smov 112   ;;  %s3361_s19 = smov 110   ;;  %vm479_vm14 = vcmask 777216   ;;  %vm4927_vm15 = vcmask 916480   ;;  %vm4928_vm1 = vcmask 769024  }
  0x17   : > { %356 = vrot.lane.b32.xlu1 %v283_v12, %s3350_s8  ;;  %s4923_s20 = smov 94   ;;  %vm458_vm3 = vcmask 785408   ;;  %vm602_vm4 = vcmask 1042432  }
  0x18   : > { %324 = vrot.lane.b32.xlu0 %v323_v13, %s3351_s9 }
  0x1b   : > { %405 = vrot.lane.b32.xlu1 %v323_v13, %s3352_s10 }
  0x1c   : > { %437 = vrot.lane.b32.xlu0 %v283_v12, %s3353_s11 }
  0x1f   : > { %488 = vrot.lane.b32.xlu1 %v323_v13, %s3354_s12 }
  0x85   : > { %v262_v14 = vpop.permute.xlu0 %261 }
  0x86   : > { %v263_v15 = vrot.slane %v262_v14, 4 }
  0x88   : > { %v265_v16 = vsel %vm264_vm2, %v263_v15, %v262_v14  ;;  %272 = vst.msk [vmem:[#allocation2 + $0x8] sm:$0x7] %vm255_vm0, %v263_v15  ;;  %vm426_vm0 = vcmask 900096  }
  0x89   : > { %271 = vst.msk [vmem:[#allocation2] sm:$0x77] %vm270_vm5, %v265_v16  ;;  %v357_v23 = vpop.permute.xlu1 %356  ;;  %vm3364_vm5 = vmmov 1  }
  0x8a   : > { %v325_v17 = vpop.permute.xlu0 %324  ;;  %v358_v34 = vrot.slane %v357_v23, 4 }
  0x8b   : > { %v326_v27 = vrot.slane %v325_v17, 4 }
  0x8c   : > { %v360_v44 = vsel %vm359_vm6, %v358_v34, %v357_v23 }
  0x8d   : > { %v406_v38 = vpop.permute.xlu1 %405  ;;  %v328_v52 = vsel %vm327_vm7, %v326_v27, %v325_v17 }
  0x8e   : > { %v3462_v19 = vpop.permute.xlu0 %437  ;;  %v407_v45 = vrot.slane %v406_v38, 4 }
  0x8f   : > { %v292_v18 = vld [vmem:[#allocation2 + $0x8] sm:$0x7]  ;;  %v439_v24 = vrot.slane %v3462_v19, 4 }
  0x90   : > { %v384_v20 = vld [vmem:[#allocation2] sm:$0x77]  ;;  %v298_v21 = vrot.slane %v292_v18, 5  ;;  %v466_v22 = vld [vmem:[#allocation2 + $0x8] sm:$0x7]  ;;  %v409_v54 = vsel %vm408_vm8, %v407_v45, %v406_v38 }
  0x91   : > { %392 = vrot.lane.b32.xlu0 %v384_v20, %s3355_s13  ;;  %v472_v25 = vrot.slane %v466_v22, 3  ;;  %v291_v26 = vld [vmem:[#allocation2] sm:$0x77]  ;;  %v3335_v28 = vld [vmem:[#allocation2 + $0x8] ss:$0 sps:$4 sm:$0x77]   ;;  %v388_v35 = vcombine.low %v384_v20, %v384_v20  ;;  %v489_v57 = vpop.permute.xlu1 %488  ;;  %v441_v16 = vsel %vm440_vm10, %v439_v24, %v3462_v19 }
  0x92   : > { %303 = vrot.lane.b32.xlu1 %v298_v21, %s3356_s14  ;;  %v436_v29 = vld [vmem:[#allocation2 + $0x8] sm:$0x7]  ;;  %v273_v31 = vld [vmem:[#allocation2] sm:$0x77]  ;;  %v296_v32 = vrot.slane %v291_v26, 5  ;;  %v295_v42 = vcombine.high %v291_v26, %v291_v26  ;;  %v490_v62 = vrot.slane %v489_v57, 4 }
  0x93   : > { %v313_v30 = vld [vmem:[#allocation2 + $0x8] sm:$0x7]  ;;  %v445_v33 = vmul.f32 %v439_v24, %v436_v29  ;;  %v285_v37 = vmul.f32 %v283_v12, %v273_v31  ;;  %v354_v43 = vld [vmem:[#allocation2] sm:$0x77]  ;;  %v532_v31 = vld [vmem:[%s4918_s3 + $0x18] sm:$0xff] }
  0x94   : > { %v332_v36 = vmul.f32 %v326_v27, %v313_v30  ;;  %v355_v39 = vld [vmem:[#allocation2 + $0x8] sm:$0x7]  ;;  %v363_v49 = vmul.f32 %v360_v44, %v354_v43  ;;  %v297_v50 = vrot.slane %v295_v42, 5  ;;  %v312_v51 = vld [vmem:[#allocation2] sm:$0x77]  ;;  %v492_v5 = vsel %vm491_vm9, %v490_v62, %v489_v57 }
  0x95   : > { %477 = vrot.lane.b32.xlu0 %v472_v25, %s3357_s15  ;;  %v287_v40 = vcombine.high %v285_v37, %v285_v37  ;;  %289 = vst [vmem:[#allocation3] sm:$0x7] %v285_v37  ;;  %v451_v41 = vrot.slane %v445_v33, 6  ;;  %v364_v47 = vmul.f32 %v358_v34, %v355_v39  ;;  %v404_v48 = vld [vmem:[#allocation2 + $0x8] sm:$0x7]  ;;  %v331_v58 = vmul.f32 %v328_v52, %v312_v51  ;;  %v533_v34 = vld [vmem:[%s4918_s3 + $0x20] sm:$0xff] }
  0x96   : > { %394 = vrot.lane.b32.xlu1 %v3335_v28, %s3355_s13  ;;  %v338_v46 = vrot.slane %v332_v36, 2  ;;  %v403_v53 = vld [vmem:[#allocation2] sm:$0x77]  ;;  %v413_v56 = vmul.f32 %v407_v45, %v404_v48  ;;  %v368_v60 = vrot.slane %v363_v49, 7  ;;  %v367_v12 = vcombine.high %v363_v49, %v363_v49  ;;  %v487_v19 = vld [vmem:[#allocation2 + $0x8] sm:$0x7] }
  0x97   : > { %290 = vst [vmem:[#allocation3 + $0x8] sm:$0x7] %v287_v40  ;;  %v370_v55 = vrot.slane %v364_v47, 7  ;;  %v412_v59 = vmul.f32 %v409_v54, %v403_v53  ;;  %v465_v63 = vld [vmem:[#allocation2] sm:$0x77]  ;;  %v335_v1 = vcombine.high %v331_v58, %v331_v58  ;;  %v336_v3 = vrot.slane %v331_v58, 2 }
  0x98   : > { %v419_v61 = vrot.slane %v413_v56, 1  ;;  %v469_v4 = vcombine.high %v465_v63, %v465_v63  ;;  %v486_v6 = vld [vmem:[#allocation2] sm:$0x77]  ;;  %v369_v17 = vrot.slane %v367_v12, 7  ;;  %v496_v24 = vmul.f32 %v490_v62, %v487_v19  ;;  %v530_v29 = vld [vmem:[%s4918_s3 + $0x8] sm:$0xff]  ;;  %v535_v36 = vld [vmem:[%s4918_s3 + $0x30] sm:$0xff] }
  0x99   : > { %299 = vrot.lane.b32.xlu0 %v296_v32, %s3356_s14  ;;  %v417_v0 = vrot.slane %v412_v59, 1  ;;  %v337_v7 = vrot.slane %v335_v1, 2  ;;  %v495_v13 = vmul.f32 %v492_v5, %v486_v6  ;;  %v435_v15 = vld [vmem:[#allocation2] sm:$0x77]  ;;  %v416_v18 = vcombine.high %v412_v59, %v412_v59  ;;  %v531_v32 = vld [vmem:[%s4918_s3 + $0x10] sm:$0xff]  ;;  %v534_v33 = vld [vmem:[%s4918_s3 + $0x28] sm:$0xff] }
  0x9a   : > { %390 = vrot.lane.b32.xlu1 %v388_v35, %s3355_s13  ;;  %v471_v14 = vrot.slane %v469_v4, 3  ;;  %v444_v20 = vmul.f32 %v441_v16, %v435_v15  ;;  %v470_v27 = vrot.slane %v465_v63, 3  ;;  %v529_v28 = vld [vmem:[%s4918_s3] sm:$0xff]  ;;  %v3363_v30 = vmov 0   ;;  %v536_v35 = vld [vmem:[%s4918_s3 + $0x38] sm:$0xff] }
  0x9b   : > { %v499_v21 = vcombine.high %v495_v13, %v495_v13  ;;  %v418_v22 = vrot.slane %v416_v18, 1  ;;  %2852 = vset.pattern.permute.xlu0 %v3363_v30  ;;  %2853 = vset.pattern.permute.xlu1 %v3363_v30  ;;  %v515_v30 = vld [vmem:[%s4917_s2 + $0x10] sm:$0xff] }
  0x9c   : > { %v449_v23 = vrot.slane %v444_v20, 6  ;;  %v448_v25 = vcombine.high %v444_v20, %v444_v20 }
  0x9d   : > { %456 = vrot.lane.b32.xlu0 %v451_v41, %s3358_s16 }
  0x9e   : > { %343 = vrot.lane.b32.xlu1 %v338_v46, %s3359_s17  ;;  %v450_v26 = vrot.slane %v448_v25, 6 }
  0xa1   : > { %301 = vrot.lane.b32.xlu0 %v297_v50, %s3356_s14 }
  0xa2   : > { %375 = vrot.lane.b32.xlu1 %v370_v55, %s4925_s18 }
  0xa5   : > { %371 = vrot.lane.b32.xlu0 %v368_v60, %s4925_s18 }
  0xa6   : > { %424 = vrot.lane.b32.xlu1 %v419_v61, %s3361_s19 }
  0xa9   : > { %420 = vrot.lane.b32.xlu0 %v417_v0, %s3361_s19 }
  0xaa   : > { %339 = vrot.lane.b32.xlu1 %v336_v3, %s3359_s17 }
  0xad   : > { %341 = vrot.lane.b32.xlu0 %v337_v7, %s3359_s17 }
  0xae   : > { %475 = vrot.lane.b32.xlu1 %v471_v14, %s3357_s15 }
  0xb1   : > { %373 = vrot.lane.b32.xlu0 %v369_v17, %s4925_s18 }
  0xb2   : > { %502 = vrot.lane.b32.xlu1 %v499_v21, %s4923_s20 }
  0xb5   : > { %422 = vrot.lane.b32.xlu0 %v418_v22, %s3361_s19 }
  0xb6   : > { %452 = vrot.lane.b32.xlu1 %v449_v23, %s3358_s16 }
  0xb9   : > { %504 = vrot.lane.b32.xlu0 %v496_v24, %s4923_s20 }
  0xba   : > { %454 = vrot.lane.b32.xlu1 %v450_v26, %s3358_s16 }
  0xbd   : > { %473 = vrot.lane.b32.xlu0 %v470_v27, %s3357_s15 }
  0xbe   : > { %500 = vrot.lane.b32.xlu1 %v495_v13, %s4923_s20 }
  0xc1   : > { %539 = vperm.xlu0 %2852, %v529_v28   ;;  %v513_v28 = vld [vmem:[%s4917_s2] sm:$0xff] }
  0xc2   : > { %544 = vperm.xlu1 %2853, %v530_v29   ;;  %v514_v29 = vld [vmem:[%s4917_s2 + $0x8] sm:$0xff] }
  0xc5   : > { %554 = vperm.xlu0 %2852, %v532_v31   ;;  %v516_v31 = vld [vmem:[%s4917_s2 + $0x18] sm:$0xff] }
  0xc6   : > { %549 = vperm.xlu1 %2853, %v531_v32   ;;  %v517_v32 = vld [vmem:[%s4917_s2 + $0x20] sm:$0xff] }
  0xc9   : > { %564 = vperm.xlu0 %2852, %v534_v33   ;;  %v518_v33 = vld [vmem:[%s4917_s2 + $0x28] sm:$0xff] }
  0xca   : > { %559 = vperm.xlu1 %2853, %v533_v34   ;;  %v519_v34 = vld [vmem:[%s4917_s2 + $0x30] sm:$0xff] }
  0xcd   : > { %574 = vperm.xlu0 %2852, %v536_v35   ;;  %v520_v35 = vld [vmem:[%s4917_s2 + $0x38] sm:$0xff] }
  0xce   : > { %569 = vperm.xlu1 %2853, %v535_v36  }
  0xd1   : > { %1560 = vrot.lane.b32.xlu0 %v3448_v11, %s3352_s10 }
  0xd2   : > { %1558 = vrot.lane.b32.xlu1 %v3446_v10, %s3352_s10 }
  0xd5   : > { %1734 = vrot.lane.b32.xlu0 %v3442_v8, %s3353_s11 }
  0xd6   : > { %1736 = vrot.lane.b32.xlu1 %v3444_v9, %s3353_s11  ;;  %s5056_s11 = sshll.u32 %s5058_s22, 3 }
  0xd7   : > { %s251_s20 = scalar_lea.vmem %s4921_s6, %s5056_s11 }
  0xd9   : > { %1062 = vrot.lane.b32.xlu0 %v3446_v10, %s3351_s9 }
  0xda   : > { %1064 = vrot.lane.b32.xlu1 %v3448_v11, %s3351_s9 }
  0xdd   : > { %1240 = vrot.lane.b32.xlu0 %v3444_v9, %s3350_s8 }
  0xde   : > { %1238 = vrot.lane.b32.xlu1 %v3442_v8, %s3350_s8 }
  0xe1   : > { %2054 = vrot.lane.b32.xlu0 %v3446_v10, %s3354_s12 }
  0xe2   : > { %2056 = vrot.lane.b32.xlu1 %v3448_v11, %s3354_s12 }
 0x103   : > { %v393_v37 = vpop.permute.xlu0 %392 }
 0x104   : > { %v304_v38 = vpop.permute.xlu1 %303 }
 0x107   : > { %v478_v39 = vpop.permute.xlu0 %477 }
 0x108   : > { %v395_v40 = vpop.permute.xlu1 %394 }
 0x109   : > { %v398_v41 = vsel %vm396_vm11, %v393_v37, %v395_v40 }
 0x10a   : > { %402 = vst [vmem:[#allocation3 + $0x18] sm:$0x70] %v398_v41 }
 0x10b   : > { %v300_v42 = vpop.permute.xlu0 %299 }
 0x10c   : > { %v391_v43 = vpop.permute.xlu1 %390 }
 0x10d   : > { %v397_v44 = vsel %vm396_vm11, %v391_v43, %v393_v37 }
 0x10e   : > { %401 = vst [vmem:[#allocation3 + $0x10] sm:$0x70] %v397_v44 }
 0x10f   : > { %v457_v45 = vpop.permute.xlu0 %456 }
 0x110   : > { %v344_v46 = vpop.permute.xlu1 %343 }
 0x113   : > { %v302_v11 = vpop.permute.xlu0 %301 }
 0x114   : > { %v306_v47 = vsel %vm305_vm12, %v300_v42, %v302_v11  ;;  %v307_v10 = vsel %vm305_vm12, %v302_v11, %v304_v38  ;;  %v376_v48 = vpop.permute.xlu1 %375 }
 0x115   : > { %310 = vst [vmem:[#allocation3] sm:$0x38] %v306_v47  ;;  %311 = vst [vmem:[#allocation3 + $0x8] sm:$0x38] %v307_v10 }
 0x117   : > { %v372_v49 = vpop.permute.xlu0 %371 }
 0x118   : > { %v425_v50 = vpop.permute.xlu1 %424 }
 0x11b   : > { %v421_v51 = vpop.permute.xlu0 %420 }
 0x11c   : > { %v340_v52 = vpop.permute.xlu1 %339 }
 0x11f   : > { %v342_v53 = vpop.permute.xlu0 %341 }
 0x120   : > { %v346_v54 = vsel %vm345_vm13, %v340_v52, %v342_v53  ;;  %v347_v55 = vsel %vm345_vm13, %v342_v53, %v344_v46  ;;  %v476_v56 = vpop.permute.xlu1 %475 }
 0x121   : > { %350 = vst [vmem:[#allocation3 + $0x10] ss:$-12 sps:$4 sm:$0xc1] %v346_v54   ;;  %351 = vst [vmem:[#allocation3 + $0x18] ss:$-12 sps:$4 sm:$0xc1] %v347_v55   ;;  %v481_v57 = vsel %vm479_vm14, %v476_v56, %v478_v39 }
 0x122   : > { %485 = vst [vmem:[#allocation3 + $0x28] sm:$0xe0] %v481_v57 }
 0x123   : > { %v374_v58 = vpop.permute.xlu0 %373 }
 0x124   : > { %v378_v59 = vsel %vm4927_vm15, %v372_v49, %v374_v58  ;;  %v379_v60 = vsel %vm4927_vm15, %v374_v58, %v376_v48  ;;  %v503_v61 = vpop.permute.xlu1 %502  ;;  %vm2672_vm15 = vmpackc.low %vm602_vm4, %vm3364_vm5 }
 0x125   : > { %382 = vst [vmem:[#allocation3 + $0x10] sm:$0xe] %v378_v59  ;;  %383 = vst [vmem:[#allocation3 + $0x18] sm:$0xe] %v379_v60 }
 0x127   : > { %v423_v62 = vpop.permute.xlu0 %422 }
 0x128   : > { %v427_v63 = vsel %vm426_vm0, %v421_v51, %v423_v62  ;;  %v428_v0 = vsel %vm426_vm0, %v423_v62, %v425_v50  ;;  %v453_v1 = vpop.permute.xlu1 %452  ;;  %v522_v13 = vld [vmem:[#allocation3 + $0x8] sm:$0xff]  ;;  %v521_v17 = vld [vmem:[#allocation3] sm:$0xff] }
 0x129   : > { %431 = vst [vmem:[#allocation3 + $0x20] ss:$-12 sps:$4 sm:$0x83] %v427_v63   ;;  %432 = vst [vmem:[#allocation3 + $0x28] ss:$-12 sps:$4 sm:$0x83] %v428_v0  }
 0x12b   : > { %v505_v3 = vpop.permute.xlu0 %504 }
 0x12c   : > { %v508_v4 = vsel %vm4928_vm1, %v503_v61, %v505_v3  ;;  %v455_v5 = vpop.permute.xlu1 %454 }
 0x12d   : > { %512 = vst [vmem:[#allocation3 + $0x38] sm:$0x7] %v508_v4  ;;  %v459_v6 = vsel %vm458_vm3, %v453_v1, %v455_v5  ;;  %v460_v7 = vsel %vm458_vm3, %v455_v5, %v457_v45 }
 0x12e   : > { %463 = vst [vmem:[#allocation3 + $0x20] sm:$0x1c] %v459_v6  ;;  %464 = vst [vmem:[#allocation3 + $0x28] sm:$0x1c] %v460_v7 }
 0x12f   : > { %v474_v12 = vpop.permute.xlu0 %473 }
 0x130   : > { %v480_v14 = vsel %vm479_vm14, %v474_v12, %v476_v56  ;;  %v501_v15 = vpop.permute.xlu1 %500  ;;  %v524_v16 = vld [vmem:[#allocation3 + $0x18] sm:$0xff]  ;;  %v523_v18 = vld [vmem:[#allocation3 + $0x10] sm:$0xff] }
 0x131   : > { %484 = vst [vmem:[#allocation3 + $0x20] sm:$0xe0] %v480_v14  ;;  %v507_v20 = vsel %vm4928_vm1, %v501_v15, %v503_v61  ;;  %v2667_v21 = vpack.c.bf16 %v524_v16, %v522_v13  ;;  %v2669_v22 = vpack.c.bf16 %v523_v18, %v521_v17  ;;  %vm577_vm1 = vcmask 220160  }
 0x132   : > { %511 = vst [vmem:[#allocation3 + $0x30] sm:$0x7] %v507_v20 }
 0x133   : > { %2668 = vmatprep.subr.bf16.mxu0 %v2667_v21 }
 0x134   : > { %2670 = vmatpush1.bf16.msra.mxu0 %v2669_v22  ;;  %v528_v23 = vld [vmem:[#allocation3 + $0x38] sm:$0x7] }
 0x135   : > { %v526_v25 = vld [vmem:[#allocation3 + $0x28] sm:$0xff] }
 0x136   : > { %v2671_v19 = vpack.c.bf16 %v528_v23, %v526_v25 }
 0x138   : > { %2673 = vmatprep.subr.msk.bf16.mxu0 %vm2672_vm15, %v2671_v19  ;;  %v525_v24 = vld [vmem:[#allocation3 + $0x20] sm:$0xff] }
 0x139   : > { %v527_v26 = vld [vmem:[#allocation3 + $0x30] sm:$0x7] }
 0x13a   : > { %v2674_v27 = vpack.c.bf16 %v527_v26, %v525_v24 }
 0x13c   : > { %2676 = vmatpush1.bf16.msk.msra.mxu0 %vm2672_vm15, %v2674_v27  ;;  %vm730_vm15 = vcmask 277640  }
 0x13d   : > { %731 = vst.msk [vmem:[#allocation4 + $0x10] sm:$0xff] %vm730_vm15, %v4929_v2  ;;  %732 = vst.msk [vmem:[#allocation4 + $0x28] sm:$0xff] %vm730_vm15, %v4929_v2 }
 0x13e   : > { %733 = vst.msk [vmem:[#allocation4 + $0x40] sm:$0xff] %vm730_vm15, %v4929_v2  ;;  %734 = vst.msk [vmem:[#allocation4 + $0x58] sm:$0xff] %vm730_vm15, %v4929_v2 }
 0x13f   : > { %2654 = vmatmul.mubr.msk.f32.vlgmr.msra.gmra.mrb[0].mxu0 %vm577_vm1, %v513_v28  ;;  %735 = vst.msk [vmem:[#allocation4 + $0x70] sm:$0xff] %vm730_vm15, %v4929_v2  ;;  %736 = vst.msk [vmem:[#allocation4 + $0x88] sm:$0xff] %vm730_vm15, %v4929_v2 }
 0x140   : > { %679 = vmatprep.mubr.f32.mxu0 %v4929_v2  ;;  %737 = vst.msk [vmem:[#allocation4 + $0xa0] sm:$0xff] %vm730_vm15, %v4929_v2  ;;  %738 = vst.msk [vmem:[#allocation4 + $0xb8] sm:$0xff] %vm730_vm15, %v4929_v2  ;;  %v540_v36 = vpop.permute.xlu0 %539 }
 0x141   : > { %v545_v40 = vpop.permute.xlu1 %544 }
 0x143   : > { %2655 = vmatmul.mubr.msk.f32.gmra.mrb[2].mxu0 %vm577_vm1, %v514_v29 }
 0x144   : > { %685 = vmatprep.mubr.f32.mxu0 %v4929_v2  ;;  %v555_v49 = vpop.permute.xlu0 %554 }
 0x145   : > { %v550_v46 = vpop.permute.xlu1 %549 }
 0x147   : > { %2656 = vmatmul.mubr.msk.f32.gmra.mrb[4].mxu0 %vm577_vm1, %v515_v30 }
 0x148   : > { %691 = vmatprep.mubr.f32.mxu0 %v4929_v2  ;;  %v565_v59 = vpop.permute.xlu0 %564 }
 0x149   : > { %v560_v54 = vpop.permute.xlu1 %559 }
 0x14b   : > { %2657 = vmatmul.mubr.msk.f32.gmra.mrb[6].mxu0 %vm577_vm1, %v516_v31 }
 0x14c   : > { %697 = vmatprep.mubr.f32.mxu0 %v4929_v2  ;;  %v575_v6 = vpop.permute.xlu0 %574 }
 0x14d   : > { %v570_v0 = vpop.permute.xlu1 %569 }
 0x14f   : > { %2658 = vmatmul.mubr.msk.f32.gmra.mrb[8].mxu0 %vm577_vm1, %v517_v32 }
 0x150   : > { %703 = vmatprep.mubr.f32.mxu0 %v4929_v2  ;;  %v3624_v16 = vpop.permute.xlu0 %1560 }
 0x151   : > { %v3622_v15 = vpop.permute.xlu1 %1558 }
 0x153   : > { %2659 = vmatmul.mubr.msk.f32.gmra.mrb[10].mxu0 %vm577_vm1, %v518_v33 }
 0x154   : > { %709 = vmatprep.mubr.f32.mxu0 %v4929_v2  ;;  %v3628_v18 = vpop.permute.xlu0 %1734 }
 0x155   : > { %v3626_v17 = vpop.permute.xlu1 %1736 }
 0x157   : > { %2660 = vmatmul.mubr.msk.f32.gmra.mrb[12].mxu0 %vm577_vm1, %v519_v34 }
 0x158   : > { %715 = vmatprep.mubr.f32.mxu0 %v4929_v2  ;;  %v3632_v21 = vpop.permute.xlu0 %1062 }
 0x159   : > { %v3630_v20 = vpop.permute.xlu1 %1064 }
 0x15b   : > { %2661 = vmatmul.mubr.msk.f32.gmra.mrb[14].mxu0 %vm577_vm1, %v520_v35  ;;  %vm819_vm1 = vcmask 1047688  }
 0x15c   : > { %v3636_v23 = vpop.permute.xlu0 %1240 }
 0x15d   : > { %v3634_v22 = vpop.permute.xlu1 %1238  ;;  %4955 = vst [vmem:[#allocation7_spill] sm:$0xff] %v3636_v23 }
 0x15e   : > { %4954 = vst [vmem:[#allocation6_spill] sm:$0xff] %v3634_v22 }
 0x160   : > { %v3640_v19 = vpop.permute.xlu0 %2054 }
 0x161   : > { %v3638_v25 = vpop.permute.xlu1 %2056  ;;  %4956 = vst [vmem:[#allocation8_spill] sm:$0xff] %v3640_v19 }
 0x212   : > { %v675_v37 = vpop.f32.mrb[0].mxu0 }
 0x213   : > { %v676_v38 = vadd.f32 %v675_v37, %v540_v36  ;;  %v677_v39 = vpop.f32.mrb[1].mxu0 }
 0x214   : > { %v678_v41 = vadd.f32 %v677_v39, %v540_v36 }
 0x215   : > { %755 = vrot.lane.b32.xlu1 %v676_v38, %s3349_s7 }
 0x216   : > { %v681_v42 = vpop.f32.mrb[2].mxu0  ;;  %757 = vrot.lane.b32.xlu0 %v678_v41, %s3349_s7 }
 0x217   : > { %v682_v43 = vadd.f32 %v681_v42, %v545_v40  ;;  %v683_v44 = vpop.f32.mrb[3].mxu0 }
 0x218   : > { %v684_v45 = vadd.f32 %v683_v44, %v545_v40 }
 0x219   : > { %759 = vrot.lane.b32.xlu1 %v682_v43, %s3349_s7 }
 0x21a   : > { %v687_v11 = vpop.f32.mrb[4].mxu0  ;;  %761 = vrot.lane.b32.xlu0 %v684_v45, %s3349_s7 }
 0x21b   : > { %v688_v47 = vadd.f32 %v687_v11, %v550_v46  ;;  %v689_v10 = vpop.f32.mrb[5].mxu0 }
 0x21c   : > { %v690_v48 = vadd.f32 %v689_v10, %v550_v46 }
 0x21d   : > { %763 = vrot.lane.b32.xlu1 %v688_v47, %s3349_s7 }
 0x21e   : > { %v693_v50 = vpop.f32.mrb[6].mxu0  ;;  %765 = vrot.lane.b32.xlu0 %v690_v48, %s3349_s7 }
 0x21f   : > { %v694_v51 = vadd.f32 %v693_v50, %v555_v49  ;;  %v695_v52 = vpop.f32.mrb[7].mxu0 }
 0x220   : > { %v696_v53 = vadd.f32 %v695_v52, %v555_v49 }
 0x221   : > { %767 = vrot.lane.b32.xlu1 %v694_v51, %s3349_s7 }
 0x222   : > { %v699_v55 = vpop.f32.mrb[8].mxu0  ;;  %769 = vrot.lane.b32.xlu0 %v696_v53, %s3349_s7 }
 0x223   : > { %v700_v56 = vadd.f32 %v699_v55, %v560_v54  ;;  %v701_v57 = vpop.f32.mrb[9].mxu0  ;;  %v3706_v55 = vsel %vm408_vm8, %v3622_v15, %v3624_v16 }
 0x224   : > { %v702_v58 = vadd.f32 %v701_v57, %v560_v54 }
 0x225   : > { %771 = vrot.lane.b32.xlu1 %v700_v56, %s3349_s7 }
 0x226   : > { %v705_v60 = vpop.f32.mrb[10].mxu0  ;;  %773 = vrot.lane.b32.xlu0 %v702_v58, %s3349_s7 }
 0x227   : > { %v706_v61 = vadd.f32 %v705_v60, %v565_v59  ;;  %v707_v62 = vpop.f32.mrb[11].mxu0 }
 0x228   : > { %v708_v63 = vadd.f32 %v707_v62, %v565_v59 }
 0x229   : > { %775 = vrot.lane.b32.xlu1 %v706_v61, %s3349_s7 }
 0x22a   : > { %v711_v1 = vpop.f32.mrb[12].mxu0  ;;  %777 = vrot.lane.b32.xlu0 %v708_v63, %s3349_s7 }
 0x22b   : > { %v712_v3 = vadd.f32 %v711_v1, %v570_v0  ;;  %v713_v4 = vpop.f32.mrb[13].mxu0 }
 0x22c   : > { %v714_v5 = vadd.f32 %v713_v4, %v570_v0 }
 0x22d   : > { %779 = vrot.lane.b32.xlu1 %v712_v3, %s3349_s7 }
 0x22e   : > { %v717_v7 = vpop.f32.mrb[14].mxu0  ;;  %781 = vrot.lane.b32.xlu0 %v714_v5, %s3349_s7  ;;  %v3737_v5 = vsel %vm440_vm10, %v3628_v18, %v3626_v17 }
 0x22f   : > { %v718_v12 = vadd.f32 %v717_v7, %v575_v6  ;;  %v719_v13 = vpop.f32.mrb[15].mxu0 }
 0x230   : > { %v720_v14 = vadd.f32 %v719_v13, %v575_v6 }
 0x231   : > { %783 = vrot.lane.b32.xlu1 %v718_v12, %s3349_s7 }
 0x232   : > { %785 = vrot.lane.b32.xlu0 %v720_v14, %s3349_s7  ;;  %s4969_s7 = smov 112  }
 0x287   : > { %v756_v24 = vpop.permute.xlu1 %755 }
 0x288   : > { %820 = vst.msk [vmem:[#allocation4] sm:$0xff] %vm819_vm1, %v756_v24  ;;  %v758_v26 = vpop.permute.xlu0 %757 }
 0x289   : > { %v3644_v27 = vsel %vm264_vm2, %v756_v24, %v758_v26  ;;  %822 = vst.msk [vmem:[#allocation4 + $0x10] sm:$0xff] %vm264_vm2, %v758_v26 }
 0x28a   : > { %821 = vst [vmem:[#allocation4 + $0x8] sm:$0xff] %v3644_v27  ;;  %v863_v31 = vmul.f32 %v3644_v27, %v3444_v9  ;;  %v1567_v57 = vmul.f32 %v3706_v55, %v3644_v27  ;;  %v1743_v12 = vmul.f32 %v3737_v5, %v3644_v27 }
 0x28b   : > { %v760_v28 = vpop.permute.xlu1 %759 }
 0x28c   : > { %823 = vst.msk [vmem:[#allocation4 + $0x18] sm:$0xff] %vm819_vm1, %v760_v28  ;;  %v762_v29 = vpop.permute.xlu0 %761 }
 0x28d   : > { %v3650_v30 = vsel %vm264_vm2, %v760_v28, %v762_v29  ;;  %825 = vst.msk [vmem:[#allocation4 + $0x28] sm:$0xff] %vm264_vm2, %v762_v29 }
 0x28e   : > { %824 = vst [vmem:[#allocation4 + $0x20] sm:$0xff] %v3650_v30  ;;  %v865_v32 = vmul.f32 %v3650_v30, %v3444_v9  ;;  %v1570_v26 = vmul.f32 %v3706_v55, %v3650_v30 }
 0x28f   : > { %v764_v33 = vpop.permute.xlu1 %763  ;;  %v3658_v34 = vld [vmem:[#allocation4] sm:$0xff] }
 0x290   : > { %826 = vst.msk [vmem:[#allocation4 + $0x30] sm:$0xff] %vm819_vm1, %v764_v33  ;;  %v766_v35 = vpop.permute.xlu0 %765  ;;  %v3661_v36 = vld [vmem:[#allocation4 + $0x10] sm:$0xff]  ;;  %v2854_v37 = vpack.i.bf16 %v3644_v27, %v3658_v34  ;;  %v2677_v38 = vpack.c.bf16 %v865_v32, %v863_v31  ;;  %v862_v45 = vmul.f32 %v3658_v34, %v3442_v8 }
 0x291   : > { %4957 = vst [vmem:[#allocation9_spill] sm:$0xff] %v3661_v36  ;;  %v3666_v39 = vsel %vm264_vm2, %v764_v33, %v766_v35  ;;  %828 = vst.msk [vmem:[#allocation4 + $0x40] sm:$0xff] %vm264_vm2, %v766_v35  ;;  %v2864_v40 = vpack.i.bf16 %v3661_v36, %v3644_v27  ;;  %v1568_v52 = vmul.f32 %v3661_v36, %v3624_v16 }
 0x292   : > { %827 = vst [vmem:[#allocation4 + $0x38] sm:$0xff] %v3666_v39  ;;  %2855 = vrot.lane.b32.xlu1 %v2854_v37, %s3356_s14  ;;  %2678 = vmatprep.subr.bf16.mxu0 %v2677_v38  ;;  %v867_v10 = vmul.f32 %v3666_v39, %v3444_v9  ;;  %v1744_v1 = vmul.f32 %v3661_v36, %v3626_v17 }
 0x293   : > { %v768_v41 = vpop.permute.xlu1 %767  ;;  %2865 = vrot.lane.b32.xlu0 %v2864_v40, %s3357_s15  ;;  %v3674_v42 = vld [vmem:[#allocation4 + $0x18] sm:$0xff]  ;;  %v2879_v62 = vpack.i.bf16 %v1568_v52, %v1567_v57  ;;  %v1072_v31 = vmul.f32 %v3661_v36, %v3630_v20  ;;  %v3763_v37 = vsel %vm327_vm7, %v3632_v21, %v3630_v20 }
 0x294   : > { %829 = vst.msk [vmem:[#allocation4 + $0x48] sm:$0xff] %vm819_vm1, %v768_v41  ;;  %v770_v43 = vpop.permute.xlu0 %769  ;;  %v2869_v44 = vpack.i.bf16 %v3674_v42, %v3661_v36  ;;  %v864_v46 = vmul.f32 %v3674_v42, %v3442_v8  ;;  %v2894_v51 = vpack.i.bf16 %v3674_v42, %v3658_v34  ;;  %v3714_v58 = vld [vmem:[#allocation4 + $0x28] sm:$0xff]  ;;  %v2884_v29 = vpack.i.bf16 %v1744_v1, %v1743_v12 }
 0x295   : > { %v3684_v11 = vsel %vm264_vm2, %v768_v41, %v770_v43  ;;  %831 = vst.msk [vmem:[#allocation4 + $0x58] sm:$0xff] %vm264_vm2, %v770_v43  ;;  %4958 = vst [vmem:[#allocation10_spill] sm:$0xff] %v3714_v58  ;;  %v3732_v4 = vpack.i.bf16 %v3714_v58, %v3650_v30  ;;  %v1571_v6 = vmul.f32 %v3624_v16, %v3714_v58 }
 0x296   : > { %830 = vst [vmem:[#allocation4 + $0x50] sm:$0xff] %v3684_v11  ;;  %2860 = vrot.lane.b32.xlu1 %v2864_v40, %s3355_s13  ;;  %v2679_v47 = vpack.c.bf16 %v864_v46, %v862_v45  ;;  %v869_v48 = vmul.f32 %v3684_v11, %v3444_v9  ;;  %v1747_v38 = vmul.f32 %v3626_v17, %v3714_v58 }
 0x297   : > { %v772_v49 = vpop.permute.xlu1 %771  ;;  %2870 = vrot.lane.b32.xlu0 %v2869_v44, %s3356_s14  ;;  %v3708_v56 = vld [vmem:[#allocation4 + $0x30] sm:$0xff]  ;;  %v2929_v35 = vpack.i.bf16 %v1571_v6, %v1570_v26  ;;  %v1071_v41 = vmul.f32 %v3763_v37, %v3644_v27  ;;  %v1746_v44 = vmul.f32 %v3737_v5, %v3650_v30 }
 0x298   : > { %832 = vst.msk [vmem:[#allocation4 + $0x60] sm:$0xff] %vm819_vm1, %v772_v49  ;;  %v774_v50 = vpop.permute.xlu0 %773  ;;  %2680 = vmatpush1.bf16.msra.mxu0 %v2679_v47  ;;  %v2681_v53 = vpack.c.bf16 %v869_v48, %v867_v10  ;;  %v866_v63 = vmul.f32 %v3708_v56, %v3442_v8 }
 0x299   : > { %v3700_v54 = vsel %vm264_vm2, %v772_v49, %v774_v50  ;;  %834 = vst.msk [vmem:[#allocation4 + $0x70] sm:$0xff] %vm264_vm2, %v774_v50  ;;  %v2889_v47 = vpack.i.bf16 %v1072_v31, %v1071_v41  ;;  %v2934_v50 = vpack.i.bf16 %v1747_v38, %v1746_v44  ;;  %v2944_v38 = vpack.i.bf16 %v3666_v39, %v3708_v56 }
 0x29a   : > { %833 = vst [vmem:[#allocation4 + $0x68] sm:$0xff] %v3700_v54  ;;  %2875 = vrot.lane.b32.xlu1 %v2894_v51, %s3355_s13  ;;  %2682 = vmatprep.subr.bf16.mxu0 %v2681_v53  ;;  %v871_v13 = vmul.f32 %v3700_v54, %v3444_v9  ;;  %v3791_v52 = vmul.f32 %v3706_v55, %v3700_v54 }
 0x29b   : > { %v776_v59 = vpop.permute.xlu1 %775  ;;  %2895 = vrot.lane.b32.xlu0 %v2894_v51, %s3357_s15  ;;  %v3717_v60 = vld [vmem:[#allocation4 + $0x48] sm:$0xff]  ;;  %v1075_v51 = vmul.f32 %v3714_v58, %v3630_v20 }
 0x29c   : > { %835 = vst.msk [vmem:[#allocation4 + $0x78] sm:$0xff] %vm819_vm1, %v776_v59  ;;  %v778_v61 = vpop.permute.xlu0 %777  ;;  %v868_v0 = vmul.f32 %v3717_v60, %v3442_v8 }
 0x29d   : > { %v3727_v3 = vsel %vm264_vm2, %v776_v59, %v778_v61  ;;  %837 = vst.msk [vmem:[#allocation4 + $0x88] sm:$0xff] %vm264_vm2, %v778_v61  ;;  %v1074_v61 = vmul.f32 %v3763_v37, %v3650_v30 }
 0x29e   : > { %836 = vst [vmem:[#allocation4 + $0x80] sm:$0xff] %v3727_v3  ;;  %2880 = vrot.lane.b32.xlu1 %v2879_v62, %s3361_s19  ;;  %v2683_v7 = vpack.c.bf16 %v868_v0, %v866_v63  ;;  %v873_v14 = vmul.f32 %v3727_v3, %v3444_v9  ;;  %v3804_v62 = vmul.f32 %v3737_v5, %v3700_v54 }
 0x29f   : > { %v780_v24 = vpop.permute.xlu1 %779  ;;  %2905 = vrot.lane.b32.xlu0 %v3732_v4, %s3355_s13  ;;  %v3767_v40 = vld [vmem:[#allocation4 + $0x60] sm:$0xff]  ;;  %v3808_v63 = vmul.f32 %v3706_v55, %v3727_v3  ;;  %v1569_v0 = vmul.f32 %v3622_v15, %v3674_v42  ;;  %v3820_v12 = vmul.f32 %v3737_v5, %v3727_v3 }
 0x2a0   : > { %838 = vst.msk [vmem:[#allocation4 + $0x90] sm:$0xff] %vm819_vm1, %v780_v24  ;;  %v782_v28 = vpop.permute.xlu0 %781  ;;  %2684 = vmatpush1.bf16.msra.mxu0 %v2683_v7  ;;  %v2685_v32 = vpack.c.bf16 %v873_v14, %v871_v13  ;;  %v870_v10 = vmul.f32 %v3767_v40, %v3442_v8  ;;  %v2939_v7 = vpack.i.bf16 %v1075_v51, %v1074_v61 }
 0x2a1   : > { %v3757_v33 = vsel %vm264_vm2, %v780_v24, %v782_v28  ;;  %840 = vst.msk [vmem:[#allocation4 + $0xa0] sm:$0xff] %vm264_vm2, %v782_v28  ;;  %v1566_v13 = vmul.f32 %v3622_v15, %v3658_v34  ;;  %v1742_v14 = vmul.f32 %v3628_v18, %v3658_v34  ;;  %v3830_v24 = vmul.f32 %v3763_v37, %v3727_v3 }
 0x2a2   : > { %839 = vst [vmem:[#allocation4 + $0x98] sm:$0xff] %v3757_v33  ;;  %2885 = vrot.lane.b32.xlu1 %v2884_v29, %s3358_s16  ;;  %2686 = vmatprep.subr.bf16.mxu0 %v2685_v32  ;;  %v875_v57 = vmul.f32 %v3757_v33, %v3444_v9  ;;  %v1745_v28 = vmul.f32 %v3628_v18, %v3674_v42 }
 0x2a3   : > { %v784_v43 = vpop.permute.xlu1 %783  ;;  %2930 = vrot.lane.b32.xlu0 %v2929_v35, %s3361_s19  ;;  %v3776_v45 = vld [vmem:[#allocation4 + $0x78] sm:$0xff]  ;;  %v3839_v29 = vmul.f32 %v3622_v15, %v3767_v40  ;;  %v2909_v35 = vpack.i.bf16 %v1569_v0, %v1566_v13  ;;  %v3892_v61 = vsel %vm359_vm6, %v3634_v22, %v3636_v23  ;;  %v3900_v13 = vmul.f32 %v3737_v5, %v3757_v33 }
 0x2a4   : > { %841 = vst.msk [vmem:[#allocation4 + $0xa8] sm:$0xff] %vm819_vm1, %v784_v43  ;;  %v786_v46 = vpop.permute.xlu0 %785  ;;  %v872_v48 = vmul.f32 %v3776_v45, %v3442_v8  ;;  %v3843_v31 = vmul.f32 %v3622_v15, %v3776_v45  ;;  %4959 = vst [vmem:[#allocation11_spill] sm:$0xff] %v3892_v61  ;;  %v2914_v0 = vpack.i.bf16 %v1745_v28, %v1742_v14 }
 0x2a5   : > { %v3784_v49 = vsel %vm264_vm2, %v784_v43, %v786_v46  ;;  %843 = vst.msk [vmem:[#allocation4 + $0xb8] sm:$0xff] %vm264_vm2, %v786_v46  ;;  %v3857_v46 = vmul.f32 %v3628_v18, %v3767_v40  ;;  %v3910_v14 = vmul.f32 %v3714_v58, %v3636_v23  ;;  %v3914_v28 = vmul.f32 %v3892_v61, %v3644_v27 }
 0x2a6   : > { %842 = vst [vmem:[#allocation4 + $0xb0] sm:$0xff] %v3784_v49  ;;  %2890 = vrot.lane.b32.xlu1 %v2889_v47, %s3359_s17  ;;  %v2687_v53 = vpack.c.bf16 %v872_v48, %v870_v10  ;;  %v877_v59 = vmul.f32 %v3784_v49, %v3444_v9  ;;  %v3816_v9 = vmul.f32 %v3763_v37, %v3700_v54  ;;  %vm5011_vm2 = vcmask 916480  }
 0x2a7   : > { %2935 = vrot.lane.b32.xlu0 %v2934_v50, %s3358_s16  ;;  %v3812_v6 = vld [vmem:[#allocation4 + $0x90] sm:$0xff]  ;;  %v3861_v47 = vmul.f32 %v3628_v18, %v3776_v45  ;;  %v3865_v10 = vmul.f32 %v3632_v21, %v3767_v40  ;;  %v3868_v50 = vld [vmem:[#allocation4 + $0x40] sm:$0xff]  ;;  %v3948_v44 = vmul.f32 %v3706_v55, %v3784_v49  ;;  %v3967_v32 = vmul.f32 %v3634_v22, %v3674_v42  ;;  %vm5012_vm6 = vmmov %vm5011_vm2 }
 0x2a8   : > { %2688 = vmatpush1.bf16.msra.mxu0 %v2687_v53  ;;  %v2689_v1 = vpack.c.bf16 %v877_v59, %v875_v57  ;;  %v874_v41 = vmul.f32 %v3812_v6, %v3442_v8  ;;  %v3880_v53 = vmul.f32 %v3763_v37, %v3757_v33  ;;  %v3887_v59 = vmul.f32 %v3706_v55, %v3757_v33  ;;  %vm5018_vm7 = vmmov %vm5011_vm2 }
 0x2a9   : > { %4963 = vst [vmem:[#allocation15_spill] sm:$0xff] %v3967_v32  ;;  %v1078_v57 = vmul.f32 %v3868_v50, %v3630_v20  ;;  %v3993_v27 = vmul.f32 %v3634_v22, %v3708_v56  ;;  %vm5019_vm8 = vmmov %vm5011_vm2 }
 0x2aa   : > { %2900 = vrot.lane.b32.xlu1 %v3732_v4, %s3356_s14  ;;  %2690 = vmatprep.subr.bf16.mxu0 %v2689_v1  ;;  %v1073_v1 = vmul.f32 %v3632_v21, %v3674_v42  ;;  %v2959_v42 = vpack.i.bf16 %v3717_v60, %v3868_v50 }
 0x2ab   : > { %2940 = vrot.lane.b32.xlu0 %v2939_v7, %s3359_s17  ;;  %v3833_v26 = vld [vmem:[#allocation4 + $0xa8] sm:$0xff] }
 0x2ac   : > { %v876_v43 = vmul.f32 %v3833_v26, %v3442_v8  ;;  %v3872_v8 = vmul.f32 %v3632_v21, %v3776_v45  ;;  %v3876_v51 = vpack.i.bf16 %v3833_v26, %v3812_v6  ;;  %v3940_v2 = vmul.f32 %v3632_v21, %v3833_v26 }
 0x2ae   : > { %2910 = vrot.lane.b32.xlu1 %v2909_v35, %s3361_s19  ;;  %v2691_v48 = vpack.c.bf16 %v876_v43, %v874_v41  ;;  %v2949_v35 = vpack.i.bf16 %v3868_v50, %v3666_v39  ;;  %v1070_v41 = vmul.f32 %v3632_v21, %v3658_v34  ;;  %v3921_v43 = vmul.f32 %v3661_v36, %v3636_v23 }
 0x2af   : > { %2945 = vrot.lane.b32.xlu0 %v2944_v38, %s3356_s14  ;;  %v3906_v38 = vmul.f32 %v3892_v61, %v3650_v30  ;;  %v3925_v30 = vmul.f32 %v3622_v15, %v3812_v6  ;;  %v3954_v23 = vmul.f32 %v3628_v18, %v3812_v6  ;;  %v2964_v61 = vpack.i.bf16 %v3717_v60, %v3708_v56 }
 0x2b0   : > { %2692 = vmatpush1.bf16.msra.mxu0 %v2691_v48  ;;  %v3929_v48 = vmul.f32 %v3622_v15, %v3833_v26  ;;  %v2919_v7 = vpack.i.bf16 %v1073_v1, %v1070_v41  ;;  %v3958_v1 = vmul.f32 %v3628_v18, %v3833_v26  ;;  %v3963_v41 = vmul.f32 %v3634_v22, %v3658_v34 }
 0x2b1   : > { %4960 = vst [vmem:[#allocation12_spill] sm:$0xff] %v3954_v23  ;;  %v3982_v34 = vmul.f32 %v3737_v5, %v3784_v49  ;;  %v1750_v23 = vmul.f32 %v3626_v17, %v3868_v50  ;;  %v1749_v36 = vmul.f32 %v3737_v5, %v3666_v39 }
 0x2b2   : > { %2915 = vrot.lane.b32.xlu1 %v2914_v0, %s3358_s16  ;;  %v3936_v0 = vmul.f32 %v3632_v21, %v3812_v6  ;;  %4961 = vst [vmem:[#allocation13_spill] sm:$0xff] %v3958_v1  ;;  %4962 = vst [vmem:[#allocation14_spill] sm:$0xff] %v3963_v41  ;;  %v4005_v41 = vmul.f32 %v3640_v19, %v3717_v60  ;;  %v1077_v1 = vmul.f32 %v3763_v37, %v3666_v39 }
 0x2b3   : > { %2950 = vrot.lane.b32.xlu0 %v2949_v35, %s3355_s13  ;;  %4964 = vst [vmem:[#allocation16_spill] sm:$0xff] %v3982_v34  ;;  %v4001_v34 = vmul.f32 %v3640_v19, %v3708_v56  ;;  %v4019_v19 = vld [vmem:[#allocation4 + $0x58] sm:$0xff] }
 0x2b5   : > { %v3264_v58 = vpack.i.bf16 %v4005_v41, %v4001_v34 }
 0x2b6   : > { %2920 = vrot.lane.b32.xlu1 %v2919_v7, %s3359_s17  ;;  %v1574_v7 = vmul.f32 %v3624_v16, %v3868_v50 }
 0x2b7   : > { %2955 = vrot.lane.b32.xlu0 %v2949_v35, %s3357_s15  ;;  %v1573_v35 = vmul.f32 %v3706_v55, %v3666_v39  ;;  %v1572_v39 = vmul.f32 %v3622_v15, %v3708_v56 }
 0x2b9   : > { %v2969_v32 = vpack.i.bf16 %v1574_v7, %v1573_v35  ;;  %v2979_v7 = vpack.i.bf16 %v1078_v57, %v1077_v1  ;;  %v2974_v35 = vpack.i.bf16 %v1750_v23, %v1749_v36  ;;  %v1575_v36 = vmul.f32 %v3622_v15, %v3717_v60 }
 0x2ba   : > { %2925 = vrot.lane.b32.xlu1 %v3732_v4, %s3357_s15  ;;  %v3997_v4 = vmul.f32 %v3634_v22, %v3717_v60  ;;  %v1079_v22 = vmul.f32 %v3632_v21, %v3717_v60  ;;  %v1577_v57 = vmul.f32 %v3624_v16, %v4019_v19  ;;  %v1753_v15 = vmul.f32 %v3626_v17, %v4019_v19 }
 0x2bb   : > { %2965 = vrot.lane.b32.xlu0 %v2964_v61, %s3355_s13  ;;  %v2999_v1 = vpack.i.bf16 %v1575_v36, %v1572_v39 }
 0x2be   : > { %2960 = vrot.lane.b32.xlu1 %v2959_v42, %s3356_s14  ;;  %v2994_v42 = vpack.i.bf16 %v4019_v19, %v3684_v11 }
 0x2bf   : > { %2970 = vrot.lane.b32.xlu0 %v2969_v32, %s3361_s19  ;;  %v1076_v32 = vmul.f32 %v3632_v21, %v3708_v56  ;;  %v1751_v21 = vmul.f32 %v3628_v18, %v3717_v60  ;;  %v1752_v60 = vmul.f32 %v3737_v5, %v3684_v11  ;;  %v3074_v5 = vpack.i.bf16 %v3776_v45, %v3767_v40 }
 0x2c1   : > { %v3009_v23 = vpack.i.bf16 %v1079_v22, %v1076_v32  ;;  %v1576_v22 = vmul.f32 %v3706_v55, %v3684_v11  ;;  %v1081_v32 = vmul.f32 %v4019_v19, %v3630_v20  ;;  %v1080_v55 = vmul.f32 %v3763_v37, %v3684_v11 }
 0x2c2   : > { %2980 = vrot.lane.b32.xlu1 %v2979_v7, %s3359_s17 }
 0x2c3   : > { %2975 = vrot.lane.b32.xlu0 %v2974_v35, %s3358_s16  ;;  %v3019_v7 = vpack.i.bf16 %v1577_v57, %v1576_v22 }
 0x2c6   : > { %2995 = vrot.lane.b32.xlu1 %v2994_v42, %s3355_s13 }
 0x2c7   : > { %2985 = vrot.lane.b32.xlu0 %v2964_v61, %s3357_s15  ;;  %v1748_v61 = vmul.f32 %v3628_v18, %v3708_v56  ;;  %v3029_v18 = vpack.i.bf16 %v1081_v32, %v1080_v55  ;;  %v4058_v56 = vld [vmem:[#allocation4 + $0x70] sm:$0xff]  ;;  %v4142_v32 = vld [vmem:[#allocation4 + $0xb8] sm:$0xff] }
 0x2c8   : > { %v3044_v36 = vpack.i.bf16 %v4058_v56, %v3700_v54  ;;  %v3049_v11 = vpack.i.bf16 %v3776_v45, %v4058_v56  ;;  %v1580_v39 = vmul.f32 %v4058_v56, %v3624_v16  ;;  %v1084_v22 = vmul.f32 %v4058_v56, %v3630_v20 }
 0x2c9   : > { %v3004_v35 = vpack.i.bf16 %v1751_v21, %v1748_v61  ;;  %v3164_v55 = vpack.i.bf16 %v3833_v26, %v4142_v32 }
 0x2ca   : > { %3010 = vrot.lane.b32.xlu1 %v3009_v23, %s3359_s17  ;;  %v3034_v23 = vpack.i.bf16 %v3700_v54, %v3767_v40  ;;  %v4076_v54 = vld [vmem:[#allocation4 + $0x88] sm:$0xff]  ;;  %v3059_v57 = vpack.i.bf16 %v1580_v39, %v3791_v52 }
 0x2cb   : > { %2990 = vrot.lane.b32.xlu0 %v2994_v42, %s3356_s14  ;;  %v3084_v21 = vpack.i.bf16 %v4076_v54, %v3727_v3  ;;  %v1583_v40 = vmul.f32 %v3624_v16, %v4076_v54  ;;  %v1759_v61 = vmul.f32 %v3626_v17, %v4076_v54  ;;  %v3069_v3 = vpack.i.bf16 %v1084_v22, %v3816_v9  ;;  %v4109_v9 = vld [vmem:[#allocation4 + $0xa0] sm:$0xff] }
 0x2cc   : > { %v4970_v22 = vpack.i.bf16 %v3921_v43, %v3914_v28 }
 0x2cd   : > { %v3109_v52 = vpack.i.bf16 %v1583_v40, %v3808_v63  ;;  %v4965_v63 = vpack.i.bf16 %v3843_v31, %v3839_v29  ;;  %v4968_v29 = vpack.i.bf16 %v3872_v8, %v3865_v10  ;;  %v1762_v8 = vmul.f32 %v3626_v17, %v4109_v9 }
 0x2ce   : > { %3015 = vrot.lane.b32.xlu1 %v2994_v42, %s3357_s15  ;;  %v3024_v42 = vpack.i.bf16 %v1753_v15, %v1752_v60  ;;  %v1087_v15 = vmul.f32 %v4076_v54, %v3630_v20 }
 0x2cf   : > { %3000 = vrot.lane.b32.xlu0 %v2999_v1, %s3361_s19  ;;  %v1756_v1 = vmul.f32 %v4058_v56, %v3626_v17 }
 0x2d1   : > { %v3064_v45 = vpack.i.bf16 %v1756_v1, %v3804_v62  ;;  %v3119_v62 = vpack.i.bf16 %v1087_v15, %v3830_v24  ;;  %v4967_v24 = vpack.i.bf16 %v3861_v47, %v3857_v46 }
 0x2d2   : > { %3020 = vrot.lane.b32.xlu1 %v3019_v7, %s3361_s19  ;;  %v3114_v7 = vpack.i.bf16 %v1759_v61, %v3820_v12  ;;  %v4966_v12 = vpack.i.bf16 %v3757_v33, %v3812_v6  ;;  %v1090_v6 = vmul.f32 %v4109_v9, %v3630_v20 }
 0x2d3   : > { %3005 = vrot.lane.b32.xlu0 %v3004_v35, %s3358_s16  ;;  %v3129_v35 = vpack.i.bf16 %v4109_v9, %v3757_v33  ;;  %v1586_v33 = vmul.f32 %v3624_v16, %v4109_v9 }
 0x2d4   : > { %v3154_v46 = vpack.i.bf16 %v1090_v6, %v3880_v53  ;;  %v3149_v53 = vpack.i.bf16 %v1762_v8, %v3900_v13  ;;  %v2031_v6 = vld [vmem:[#allocation4 + $0x8] sm:$0xff] }
 0x2d5   : > { %v3144_v10 = vpack.i.bf16 %v1586_v33, %v3887_v59 }
 0x2d6   : > { %3025 = vrot.lane.b32.xlu1 %v3024_v42, %s3358_s16 }
 0x2d7   : > { %3030 = vrot.lane.b32.xlu0 %v3029_v18, %s3359_s17  ;;  %v3169_v18 = vpack.i.bf16 %v4142_v32, %v3784_v49 }
 0x2da   : > { %3035 = vrot.lane.b32.xlu1 %v3034_v23, %s3356_s14 }
 0x2db   : > { %3045 = vrot.lane.b32.xlu0 %v3044_v36, %s3357_s15 }
 0x2de   : > { %3040 = vrot.lane.b32.xlu1 %v3044_v36, %s3355_s13 }
 0x2df   : > { %3050 = vrot.lane.b32.xlu0 %v3049_v11, %s3356_s14 }
 0x2e2   : > { %3055 = vrot.lane.b32.xlu1 %v3074_v5, %s3355_s13 }
 0x2e3   : > { %3075 = vrot.lane.b32.xlu0 %v3074_v5, %s3357_s15 }
 0x2e6   : > { %3060 = vrot.lane.b32.xlu1 %v3059_v57, %s3361_s19 }
 0x2e7   : > { %3085 = vrot.lane.b32.xlu0 %v3084_v21, %s3355_s13 }
 0x2ea   : > { %3065 = vrot.lane.b32.xlu1 %v3064_v45, %s3358_s16 }
 0x2eb   : > { %3110 = vrot.lane.b32.xlu0 %v3109_v52, %s3361_s19 }
 0x2ee   : > { %3070 = vrot.lane.b32.xlu1 %v3069_v3, %s3359_s17 }
 0x2ef   : > { %3115 = vrot.lane.b32.xlu0 %v3114_v7, %s3358_s16 }
 0x2f2   : > { %3080 = vrot.lane.b32.xlu1 %v3084_v21, %s3356_s14 }
 0x2f3   : > { %3120 = vrot.lane.b32.xlu0 %v3119_v62, %s3359_s17 }
 0x2f6   : > { %3090 = vrot.lane.b32.xlu1 %v4965_v63, %s3361_s19 }
 0x2f7   : > { %3125 = vrot.lane.b32.xlu0 %v4966_v12, %s3356_s14 }
 0x2fa   : > { %3095 = vrot.lane.b32.xlu1 %v4967_v24, %s3358_s16  ;;  %v4972_v24 = vpack.i.bf16 %v3940_v2, %v3936_v0  ;;  %v3189_v0 = vpack.i.bf16 %v3784_v49, %v4109_v9 }
 0x2fb   : > { %3130 = vrot.lane.b32.xlu0 %v3129_v35, %s3355_s13 }
 0x2fe   : > { %3100 = vrot.lane.b32.xlu1 %v4968_v29, %s3359_s17  ;;  %v4973_v29 = vpack.i.bf16 %v3929_v48, %v3925_v30 }
 0x2ff   : > { %3135 = vrot.lane.b32.xlu0 %v3129_v35, %s3357_s15 }
 0x302   : > { %3105 = vrot.lane.b32.xlu1 %v3084_v21, %s3357_s15 }
 0x303   : > { %3140 = vrot.lane.b32.xlu0 %v3876_v51, %s3355_s13 }
 0x304   : > { %v4134_v31 = vpop.permute.xlu1 %2855 }
 0x305   : > { %v4137_v47 = vpop.permute.xlu0 %2865 }
 0x306   : > { %3155 = vrot.lane.b32.xlu1 %v3154_v46, %s3359_s17  ;;  %v2867_v36 = vunpack.i.l.bf16 %v4137_v47 }
 0x307   : > { %3145 = vrot.lane.b32.xlu0 %v3144_v10, %s3361_s19  ;;  %v2034_v10 = vld [vmem:[#allocation4 + $0x20] sm:$0xff] }
 0x308   : > { %v2861_v60 = vpop.permute.xlu1 %2860 }
 0x309   : > { %v4148_v42 = vpop.permute.xlu0 %2870  ;;  %v2863_v26 = vunpack.i.h.bf16 %v2861_v60  ;;  %v2862_v5 = vunpack.i.l.bf16 %v2861_v60  ;;  %v4974_v60 = vld [vmem:[#allocation8_spill] sm:$0xff] }
 0x30a   : > { %3165 = vrot.lane.b32.xlu1 %v3164_v55, %s3356_s14  ;;  %v4221_v55 = vsel %vm491_vm9, %v4974_v60, %v3638_v25  ;;  %vm5020_vm9 = vcmask 769024  }
 0x30b   : > { %3150 = vrot.lane.b32.xlu0 %v3149_v53, %s3358_s16  ;;  %v1487_v52 = vsel %vm396_vm11, %v2862_v5, %v2863_v26  ;;  %v2063_v26 = vmul.f32 %v4221_v55, %v2031_v6  ;;  %v4977_v6 = vld [vmem:[#allocation13_spill] sm:$0xff]  ;;  %vm5021_vm10 = vmmov %vm5020_vm9 }
 0x30c   : > { %v2876_v59 = vpop.permute.xlu1 %2875  ;;  %vm5035_vm5 = vmmov %vm5020_vm9 }
 0x30d   : > { %v4155_v23 = vpop.permute.xlu0 %2895  ;;  %v2877_v39 = vunpack.i.l.bf16 %v2876_v59  ;;  %v2878_v21 = vunpack.i.h.bf16 %v2876_v59  ;;  %vm5036_vm15 = vmmov %vm5035_vm5 }
 0x30e   : > { %v2897_v11 = vunpack.i.l.bf16 %v4155_v23  ;;  %3170 = vrot.lane.b32.xlu1 %v3169_v18, %s3355_s13  ;;  %s4983_s13 = smov 94  }
 0x30f   : > { %3160 = vrot.lane.b32.xlu0 %v3876_v51, %s3357_s15  ;;  %v4971_v51 = vpack.i.bf16 %v3910_v14, %v3906_v38  ;;  %v1486_v61 = vsel %vm396_vm11, %v2877_v39, %v2862_v5  ;;  %v1589_v38 = vmul.f32 %v3624_v16, %v4142_v32  ;;  %v4975_v5 = vld [vmem:[#allocation9_spill] sm:$0xff]  ;;  %v2857_v39 = vunpack.i.l.bf16 %v4134_v31 }
 0x310   : > { %v4162_v13 = vpop.permute.xlu1 %2880  ;;  %v4167_v57 = vsel %vm479_vm14, %v2897_v11, %v2867_v36  ;;  %v2064_v49 = vmul.f32 %v3638_v25, %v4975_v5  ;;  %v2030_v5 = vld [vmem:[#allocation4] sm:$0xff] }
 0x311   : > { %v2906_v1 = vpop.permute.xlu0 %2905  ;;  %v2883_v3 = vunpack.i.h.bf16 %v4162_v13  ;;  %v2882_v7 = vunpack.i.l.bf16 %v4162_v13  ;;  %v3209_v8 = vpack.i.bf16 %v1589_v38, %v3948_v44  ;;  %v2858_v44 = vunpack.i.h.bf16 %v4134_v31  ;;  %v4976_v38 = vld [vmem:[#allocation10_spill] sm:$0xff] }
 0x312   : > { %v2908_v40 = vunpack.i.h.bf16 %v2906_v1  ;;  %v2907_v45 = vunpack.i.l.bf16 %v2906_v1  ;;  %3175 = vrot.lane.b32.xlu1 %v4970_v22, %s4969_s7  ;;  %v2872_v1 = vunpack.i.l.bf16 %v4148_v42 }
 0x313   : > { %3180 = vrot.lane.b32.xlu0 %v4971_v51, %s4969_s7  ;;  %v4206_v2 = vsel %vm426_vm0, %v2882_v7, %v2883_v3  ;;  %v2873_v51 = vunpack.i.h.bf16 %v4148_v42  ;;  %v990_v42 = vsel %vm305_vm12, %v2857_v39, %v2858_v44 }
 0x314   : > { %v4181_v15 = vpop.permute.xlu1 %2885  ;;  %v1489_v62 = vsel %vm396_vm11, %v2907_v45, %v2908_v40  ;;  %v1488_v28 = vsel %vm396_vm11, %v2878_v21, %v2907_v45  ;;  %v2066_v21 = vmul.f32 %v4221_v55, %v2034_v10 }
 0x315   : > { %v4185_v43 = vpop.permute.xlu0 %2930  ;;  %v2741_v63 = vpack.c.bf16 %v1489_v62, %v1487_v52  ;;  %v2743_v12 = vpack.c.bf16 %v1488_v28, %v1486_v61  ;;  %v2888_v33 = vunpack.i.h.bf16 %v4181_v15  ;;  %v2887_v16 = vunpack.i.l.bf16 %v4181_v15 }
 0x316   : > { %v2933_v14 = vunpack.i.h.bf16 %v4185_v43  ;;  %v2932_v35 = vunpack.i.l.bf16 %v4185_v43  ;;  %3200 = vrot.lane.b32.xlu1 %v4972_v24, %s3359_s17  ;;  %v2033_v24 = vld [vmem:[#allocation4 + $0x18] sm:$0xff] }
 0x317   : > { %3185 = vrot.lane.b32.xlu0 %v4973_v29, %s3361_s19  ;;  %2742 = vmatprep.subr.bf16.mxu1 %v2741_v63  ;;  %v4241_v22 = vsel %vm458_vm3, %v2887_v16, %v2888_v33  ;;  %v4978_v33 = vld [vmem:[#allocation12_spill] sm:$0xff] }
 0x318   : > { %2744 = vmatpush1.bf16.msra.mxu1 %v2743_v12  ;;  %v4201_v46 = vpop.permute.xlu1 %2890  ;;  %v4211_v30 = vsel %vm426_vm0, %v2932_v35, %v2933_v14  ;;  %v3219_v12 = vpack.i.bf16 %v2064_v49, %v2063_v26  ;;  %v2067_v14 = vmul.f32 %v3638_v25, %v4976_v38  ;;  %v4979_v10 = vpack.i.bf16 %v4977_v6, %v4978_v33 }
 0x319   : > { %v4213_v48 = vpop.permute.xlu0 %2935  ;;  %v2893_v40 = vunpack.i.h.bf16 %v4201_v46  ;;  %v2892_v45 = vunpack.i.l.bf16 %v4201_v46 }
 0x31a   : > { %v2938_v59 = vunpack.i.h.bf16 %v4213_v48  ;;  %v2937_v11 = vunpack.i.l.bf16 %v4213_v48  ;;  %3205 = vrot.lane.b32.xlu1 %v3169_v18, %s3357_s15  ;;  %v2070_v48 = vmul.f32 %v3638_v25, %v3868_v50 }
 0x31b   : > { %3190 = vrot.lane.b32.xlu0 %v3189_v0, %s3356_s14  ;;  %v991_v0 = vsel %vm305_vm12, %v2858_v44, %v2872_v1  ;;  %v4269_v39 = vsel %vm345_vm13, %v2892_v45, %v2893_v40  ;;  %v2065_v44 = vmul.f32 %v4974_v60, %v2033_v24  ;;  %v1224_v1 = vld [vmem:[#allocation4 + $0x50] sm:$0xff]  ;;  %v2062_v40 = vmul.f32 %v4974_v60, %v2030_v5 }
 0x31c   : > { %v2901_v18 = vpop.permute.xlu1 %2900  ;;  %v4246_v31 = vsel %vm458_vm3, %v2937_v11, %v2938_v59 }
 0x31d   : > { %v2903_v52 = vunpack.i.h.bf16 %v2901_v18  ;;  %v2902_v61 = vunpack.i.l.bf16 %v2901_v18  ;;  %v4249_v3 = vpop.permute.xlu0 %2940  ;;  %v1221_v18 = vld [vmem:[#allocation4 + $0x38] sm:$0xff] }
 0x31e   : > { %v2943_v28 = vunpack.i.h.bf16 %v4249_v3  ;;  %v2942_v63 = vunpack.i.l.bf16 %v4249_v3  ;;  %3210 = vrot.lane.b32.xlu1 %v3209_v8, %s3361_s19 }
 0x31f   : > { %v992_v29 = vsel %vm305_vm12, %v2873_v51, %v2902_v61  ;;  %3195 = vrot.lane.b32.xlu0 %v4979_v10, %s3358_s16  ;;  %v993_v59 = vsel %vm305_vm12, %v2902_v61, %v2903_v52  ;;  %v4980_v61 = vld [vmem:[#allocation15_spill] sm:$0xff] }
 0x320   : > { %v2695_v8 = vpack.c.bf16 %v992_v29, %v990_v42  ;;  %v2911_v26 = vpop.permute.xlu1 %2910  ;;  %v2693_v49 = vpack.c.bf16 %v993_v59, %v991_v0  ;;  %v4272_v51 = vsel %vm345_vm13, %v2942_v63, %v2943_v28  ;;  %v4981_v42 = vld [vmem:[#allocation14_spill] sm:$0xff]  ;;  %v4984_v28 = vld [vmem:[#allocation11_spill] sm:$0xff]  ;;  %v3224_v59 = vpack.i.bf16 %v2067_v14, %v2066_v21 }
 0x321   : > { %v2913_v3 = vunpack.i.h.bf16 %v2911_v26  ;;  %v2912_v38 = vunpack.i.l.bf16 %v2911_v26  ;;  %v4274_v6 = vpop.permute.xlu0 %2945  ;;  %v4982_v29 = vpack.i.bf16 %v4980_v61, %v4981_v42  ;;  %v1253_v33 = vmul.f32 %v4984_v28, %v1221_v18  ;;  %v4985_v26 = vld [vmem:[#allocation7_spill] sm:$0xff] }
 0x322   : > { %2694 = vmatprep.subr.bf16.mxu0 %v2693_v49  ;;  %v1254_v5 = vmul.f32 %v3868_v50, %v4985_v26  ;;  %v1257_v43 = vmul.f32 %v4019_v19, %v4985_v26 }
 0x323   : > { %3215 = vrot.lane.b32.xlu1 %v4982_v29, %s4969_s7  ;;  %3220 = vrot.lane.b32.xlu0 %v3219_v12, %s4983_s13  ;;  %v4289_v24 = vsel %vm426_vm0, %v2912_v38, %v2882_v7  ;;  %v4294_v10 = vsel %vm426_vm0, %v2913_v3, %v2932_v35  ;;  %v1256_v12 = vmul.f32 %v4984_v28, %v1224_v1 }
 0x324   : > { %2696 = vmatpush1.bf16.msra.mxu0 %v2695_v8  ;;  %v2916_v0 = vpop.permute.xlu1 %2915  ;;  %v3229_v7 = vpack.i.bf16 %v2065_v44, %v2062_v40  ;;  %v3234_v3 = vpack.i.bf16 %v1254_v5, %v1253_v33  ;;  %v1765_v38 = vmul.f32 %v3626_v17, %v4142_v32  ;;  %v2069_v44 = vmul.f32 %v4221_v55, %v1221_v18 }
 0x325   : > { %v2918_v49 = vunpack.i.h.bf16 %v2916_v0  ;;  %v2917_v13 = vunpack.i.l.bf16 %v2916_v0  ;;  %v4301_v61 = vpop.permute.xlu0 %2950  ;;  %v2898_v5 = vunpack.i.h.bf16 %v4155_v23 }
 0x326   : > { %v3254_v46 = vpack.i.bf16 %v2070_v48, %v2069_v44  ;;  %v1260_v48 = vmul.f32 %v4058_v56, %v4985_v26  ;;  %v2952_v42 = vunpack.i.l.bf16 %v4301_v61 }
 0x327   : > { %3225 = vrot.lane.b32.xlu1 %v3224_v59, %s4983_s13  ;;  %3230 = vrot.lane.b32.xlu0 %v3229_v7, %s4983_s13  ;;  %v4310_v35 = vsel %vm458_vm3, %v2917_v13, %v2887_v16  ;;  %v4315_v21 = vsel %vm458_vm3, %v2918_v49, %v2937_v11  ;;  %v3239_v16 = vpack.i.bf16 %v1257_v43, %v1256_v12  ;;  %v2868_v11 = vunpack.i.h.bf16 %v4137_v47  ;;  %v4986_v59 = vld [vmem:[#allocation16_spill] sm:$0xff]  ;;  %v1227_v7 = vld [vmem:[#allocation4 + $0x68] sm:$0xff] }
 0x328   : > { %v2921_v14 = vpop.permute.xlu1 %2920  ;;  %v3244_v50 = vpack.i.bf16 %v1765_v38, %v4986_v59  ;;  %v4345_v43 = vld [vmem:[#allocation4 + $0xb0] sm:$0xff]  ;;  %v1226_v59 = vld [vmem:[#allocation4 + $0x60] sm:$0xff]  ;;  %v4391_v47 = vmul.f32 %v3638_v25, %v4058_v56 }
 0x329   : > { %v2923_v29 = vunpack.i.h.bf16 %v2921_v14  ;;  %v2922_v15 = vunpack.i.l.bf16 %v2921_v14  ;;  %v4322_v40 = vpop.permute.xlu0 %2955  ;;  %v2073_v14 = vmul.f32 %v3638_v25, %v4019_v19  ;;  %v4353_v23 = vsel %vm479_vm14, %v2867_v36, %v2868_v11  ;;  %v4422_v19 = vld [vmem:[#allocation4 + $0x90] sm:$0xff] }
 0x32a   : > { %v1092_v11 = vmul.f32 %v3763_v37, %v4345_v43  ;;  %v4402_v37 = vmul.f32 %v3638_v25, %v4076_v54 }
 0x32b   : > { %3235 = vrot.lane.b32.xlu1 %v3234_v3, %s4969_s7  ;;  %v4331_v17 = vsel %vm345_vm13, %v2922_v15, %v2892_v45  ;;  %v4334_v18 = vsel %vm345_vm13, %v2923_v29, %v2942_v63  ;;  %3240 = vrot.lane.b32.xlu0 %v3239_v16, %s4969_s7  ;;  %v1230_v45 = vld [vmem:[#allocation4 + $0x80] sm:$0xff]  ;;  %v2072_v63 = vmul.f32 %v4221_v55, %v1224_v1  ;;  %v1229_v3 = vld [vmem:[#allocation4 + $0x78] sm:$0xff] }
 0x32c   : > { %v2926_v0 = vpop.permute.xlu1 %2925  ;;  %v1262_v29 = vmul.f32 %v4984_v28, %v1230_v45  ;;  %v1263_v15 = vmul.f32 %v4076_v54, %v4985_v26  ;;  %v1259_v16 = vmul.f32 %v4984_v28, %v1227_v7 }
 0x32d   : > { %v2928_v12 = vunpack.i.h.bf16 %v2926_v0  ;;  %v2927_v49 = vunpack.i.l.bf16 %v2926_v0  ;;  %v4341_v13 = vpop.permute.xlu0 %2965  ;;  %v1093_v0 = vmul.f32 %v3630_v20, %v4142_v32  ;;  %v4398_v20 = vmul.f32 %v4221_v55, %v1230_v45 }
 0x32e   : > { %v3274_v34 = vpack.i.bf16 %v1263_v15, %v1262_v29  ;;  %v3269_v54 = vpack.i.bf16 %v1260_v48, %v1259_v16  ;;  %v2967_v15 = vunpack.i.l.bf16 %v4341_v13 }
 0x32f   : > { %3245 = vrot.lane.b32.xlu1 %v3244_v50, %s3358_s16  ;;  %3255 = vrot.lane.b32.xlu0 %v3254_v46, %s4983_s13  ;;  %v4356_v38 = vsel %vm479_vm14, %v2927_v49, %v2928_v12  ;;  %v4359_v44 = vsel %vm479_vm14, %v2898_v5, %v2927_v49  ;;  %v1233_v50 = vld [vmem:[#allocation4 + $0x98] sm:$0xff]  ;;  %v4987_v5 = vpack.i.bf16 %v3997_v4, %v3993_v27  ;;  %v4988_v12 = vld [vmem:[#allocation6_spill] sm:$0xff] }
 0x330   : > { %v4361_v1 = vpop.permute.xlu1 %2960  ;;  %v4384_v49 = vmul.f32 %v4988_v12, %v1229_v3  ;;  %v4387_v46 = vmul.f32 %v4221_v55, %v1227_v7  ;;  %v4405_v27 = vmul.f32 %v4974_v60, %v1229_v3  ;;  %v3259_v7 = vpack.i.bf16 %v2073_v14, %v2072_v63  ;;  %v4424_v63 = vld [vmem:[#allocation4 + $0xa8] sm:$0xff] }
 0x331   : > { %v4370_v36 = vpop.permute.xlu0 %2970  ;;  %v1258_v56 = vmul.f32 %v4988_v12, %v1226_v59  ;;  %v3284_v45 = vpack.i.bf16 %v1093_v0, %v1092_v11  ;;  %v4420_v3 = vmul.f32 %v4974_v60, %v1226_v59  ;;  %v2953_v14 = vunpack.i.h.bf16 %v4301_v61 }
 0x332   : > { %v3289_v29 = vpack.i.bf16 %v4391_v47, %v4387_v46  ;;  %v3294_v16 = vpack.i.bf16 %v4402_v37, %v4398_v20  ;;  %v4439_v11 = vmul.f32 %v4221_v55, %v1233_v50  ;;  %v4445_v47 = vmul.f32 %v3638_v25, %v4109_v9 }
 0x333   : > { %3250 = vrot.lane.b32.xlu1 %v4987_v5, %s4969_s7  ;;  %3265 = vrot.lane.b32.xlu0 %v3264_v58, %s4983_s13  ;;  %v4411_v5 = vmul.f32 %v4984_v28, %v1233_v50  ;;  %v4415_v58 = vmul.f32 %v4109_v9, %v4985_v26  ;;  %v3279_v62 = vpack.i.bf16 %v4384_v49, %v1258_v56  ;;  %v2948_v46 = vunpack.i.h.bf16 %v4274_v6 }
 0x334   : > { %v4407_v4 = vpop.permute.xlu1 %2980  ;;  %v3299_v48 = vpack.i.bf16 %v4405_v27, %v4420_v3  ;;  %v4449_v59 = vmul.f32 %v4988_v12, %v4422_v19  ;;  %v4453_v49 = vmul.f32 %v4988_v12, %v4424_v63  ;;  %v2968_v50 = vunpack.i.h.bf16 %v4341_v13  ;;  %v4464_v12 = vld [vmem:[%s4919_s4 + $0x8] sm:$0x77] }
 0x335   : > { %v4417_v41 = vpop.permute.xlu0 %2975  ;;  %v3304_v0 = vpack.i.bf16 %v4415_v58, %v4411_v5  ;;  %v2957_v9 = vunpack.i.l.bf16 %v4322_v40  ;;  %4989 = vst [vmem:[#allocation8_spill] sm:$0xff] %v4464_v12  ;;  %v1490_v3 = vsel %vm396_vm11, %v2967_v15, %v2952_v42  ;;  %v4486_v15 = vmul.f32 %v4985_v26, %v4142_v32 }
 0x337   : > { %3260 = vrot.lane.b32.xlu1 %v3259_v7, %s4983_s13  ;;  %3275 = vrot.lane.b32.xlu0 %v3274_v34, %s4969_s7  ;;  %v2947_v7 = vunpack.i.l.bf16 %v4274_v6  ;;  %v1491_v34 = vsel %vm396_vm11, %v2952_v42, %v2953_v14  ;;  %v4482_v42 = vmul.f32 %v4984_v28, %v4345_v43  ;;  %v2958_v28 = vunpack.i.h.bf16 %v4322_v40 }
 0x338   : > { %v2996_v61 = vpop.permute.xlu1 %2995 }
 0x339   : > { %v2998_v20 = vunpack.i.h.bf16 %v2996_v61  ;;  %v2997_v37 = vunpack.i.l.bf16 %v2996_v61  ;;  %v2986_v27 = vpop.permute.xlu0 %2985  ;;  %v2363_v61 = vcombine.high %v4464_v12, %v4464_v12  ;;  %v3319_v58 = vpack.i.bf16 %v4486_v15, %v4482_v42 }
 0x33a   : > { %v2987_v56 = vunpack.i.l.bf16 %v2986_v27 }
 0x33b   : > { %3270 = vrot.lane.b32.xlu1 %v3269_v54, %s4969_s7  ;;  %3285 = vrot.lane.b32.xlu0 %v3284_v45, %s3359_s17  ;;  %v1493_v13 = vsel %vm396_vm11, %v2997_v37, %v2998_v20  ;;  %v1492_v6 = vsel %vm396_vm11, %v2968_v50, %v2997_v37  ;;  %v2962_v54 = vunpack.i.l.bf16 %v4361_v1  ;;  %v2982_v45 = vunpack.i.l.bf16 %v4407_v4 }
 0x33c   : > { %v4473_v33 = vpop.permute.xlu1 %3010  ;;  %v2745_v14 = vpack.c.bf16 %v1493_v13, %v1491_v34  ;;  %v2747_v52 = vpack.c.bf16 %v1492_v6, %v1490_v3  ;;  %v4476_v8 = vsel %vm479_vm14, %v2987_v56, %v2957_v9  ;;  %2504 = vmatprep.mubr.f32.mxu1 %v2363_v61  ;;  %v2963_v50 = vunpack.i.h.bf16 %v4361_v1 }
 0x33d   : > { %4990 = vst [vmem:[#allocation9_spill] sm:$0xff] %v4476_v8  ;;  %v3012_v20 = vunpack.i.l.bf16 %v4473_v33  ;;  %v2991_v53 = vpop.permute.xlu0 %2990  ;;  %v3314_v56 = vpack.i.bf16 %v4445_v47, %v4439_v11  ;;  %v994_v13 = vsel %vm305_vm12, %v2947_v7, %v2948_v46  ;;  %v995_v47 = vsel %vm305_vm12, %v2948_v46, %v2962_v54 }
 0x33e   : > { %v2993_v37 = vunpack.i.h.bf16 %v2991_v53  ;;  %v2992_v34 = vunpack.i.l.bf16 %v2991_v53  ;;  %2746 = vmatprep.subr.bf16.mxu1 %v2745_v14  ;;  %v4502_v53 = vmul.f32 %v4221_v55, %v4345_v43  ;;  %v2085_v55 = vmul.f32 %v3638_v25, %v4142_v32 }
 0x33f   : > { %3280 = vrot.lane.b32.xlu1 %v3279_v62, %s4969_s7  ;;  %v4497_v26 = vsel %vm345_vm13, %v3012_v20, %v2982_v45  ;;  %3290 = vrot.lane.b32.xlu0 %v3289_v29, %s4983_s13  ;;  %v2988_v62 = vunpack.i.h.bf16 %v2986_v27  ;;  %v2973_v29 = vunpack.i.h.bf16 %v4370_v36  ;;  %v4514_v43 = vsel %vm479_vm14, %v2957_v9, %v2958_v28 }
 0x340   : > { %2748 = vmatpush1.bf16.msra.mxu1 %v2747_v52  ;;  %v996_v1 = vsel %vm305_vm12, %v2963_v50, %v2992_v34  ;;  %v3016_v11 = vpop.permute.xlu1 %3015  ;;  %v997_v40 = vsel %vm305_vm12, %v2992_v34, %v2993_v37  ;;  %v2972_v52 = vunpack.i.l.bf16 %v4370_v36  ;;  %4991 = vst [vmem:[#allocation10_spill] sm:$0xff] %v4514_v43  ;;  %v3309_v34 = vpack.i.bf16 %v4453_v49, %v4449_v59 }
 0x341   : > { %v2699_v7 = vpack.c.bf16 %v996_v1, %v994_v13  ;;  %v3018_v3 = vunpack.i.h.bf16 %v3016_v11  ;;  %v3017_v6 = vunpack.i.l.bf16 %v3016_v11  ;;  %v3001_v61 = vpop.permute.xlu0 %3000  ;;  %v2697_v14 = vpack.c.bf16 %v997_v40, %v995_v47 }
 0x342   : > { %v3002_v20 = vunpack.i.l.bf16 %v3001_v61  ;;  %v2977_v13 = vunpack.i.l.bf16 %v4417_v41  ;;  %v2983_v59 = vunpack.i.h.bf16 %v4407_v4  ;;  %v2978_v49 = vunpack.i.h.bf16 %v4417_v41 }
 0x343   : > { %3295 = vrot.lane.b32.xlu1 %v3294_v16, %s4983_s13  ;;  %3300 = vrot.lane.b32.xlu0 %v3299_v48, %s4983_s13  ;;  %v4517_v46 = vsel %vm479_vm14, %v3017_v6, %v3018_v3  ;;  %v4520_v27 = vsel %vm479_vm14, %v2988_v62, %v3017_v6  ;;  %v2080_v16 = vmul.f32 %v4974_v60, %v4422_v19  ;;  %v3003_v48 = vunpack.i.h.bf16 %v3001_v61  ;;  %v4536_v19 = vld [vmem:[%s4919_s4] sm:$0x77] }
 0x344   : > { %2698 = vmatprep.subr.bf16.mxu0 %v2697_v14  ;;  %4992 = vst [vmem:[#allocation13_spill] sm:$0xff] %v4517_v46  ;;  %4993 = vst [vmem:[#allocation12_spill] sm:$0xff] %v4520_v27  ;;  %v3021_v36 = vpop.permute.xlu1 %3020  ;;  %v4525_v54 = vsel %vm426_vm0, %v3002_v20, %v2972_v52  ;;  %v4544_v62 = vsel %vm426_vm0, %v2972_v52, %v2973_v29  ;;  %v2362_v1 = vcombine.high %v4536_v19, %v4536_v19 }
 0x345   : > { %2700 = vmatpush1.bf16.msra.mxu0 %v2699_v7  ;;  %v3023_v9 = vunpack.i.h.bf16 %v3021_v36  ;;  %v3022_v50 = vunpack.i.l.bf16 %v3021_v36  ;;  %v3006_v37 = vpop.permute.xlu0 %3005  ;;  %4994 = vst [vmem:[#allocation15_spill] sm:$0xff] %v4536_v19  ;;  %v2083_v61 = vmul.f32 %v4974_v60, %v4424_v63  ;;  %v3013_v14 = vunpack.i.h.bf16 %v4473_v33 }
 0x346   : > { %v3007_v28 = vunpack.i.l.bf16 %v3006_v37  ;;  %2433 = vmatprep.mubr.f32.mxu0 %v2362_v1  ;;  %v3324_v29 = vpack.i.bf16 %v2085_v55, %v4502_v53  ;;  %v4575_v52 = vsel %vm345_vm13, %v2982_v45, %v2983_v59  ;;  %v4578_v20 = vsel %vm458_vm3, %v2977_v13, %v2978_v49 }
 0x347   : > { %3305 = vrot.lane.b32.xlu1 %v3304_v0, %s4969_s7  ;;  %3315 = vrot.lane.b32.xlu0 %v3314_v56, %s4983_s13  ;;  %v4552_v11 = vsel %vm426_vm0, %v3022_v50, %v3023_v9  ;;  %v4555_v47 = vsel %vm426_vm0, %v3003_v48, %v3022_v50  ;;  %v3008_v56 = vunpack.i.h.bf16 %v3006_v37  ;;  %v3329_v9 = vpack.i.bf16 %v2083_v61, %v2080_v16  ;;  %v2353_v37 = vld [vmem:[%s4920_s5] sm:$0x7] }
 0x348   : > { %v3026_v5 = vpop.permute.xlu1 %3025  ;;  %v4564_v41 = vsel %vm458_vm3, %v3007_v28, %v2977_v13 }
 0x349   : > { %v3028_v7 = vunpack.i.h.bf16 %v3026_v5  ;;  %v3027_v3 = vunpack.i.l.bf16 %v3026_v5  ;;  %v3031_v6 = vpop.permute.xlu0 %3030 }
 0x34a   : > { %v3033_v42 = vunpack.i.h.bf16 %v3031_v6  ;;  %v3032_v15 = vunpack.i.l.bf16 %v3031_v6 }
 0x34b   : > { %3310 = vrot.lane.b32.xlu1 %v3309_v34, %s4969_s7  ;;  %3320 = vrot.lane.b32.xlu0 %v3319_v58, %s4969_s7  ;;  %v4581_v60 = vsel %vm458_vm3, %v3027_v3, %v3028_v7  ;;  %v4584_v33 = vsel %vm458_vm3, %v3008_v56, %v3027_v3 }
 0x34c   : > { %v4587_v63 = vsel %vm345_vm13, %v3013_v14, %v3032_v15  ;;  %v3036_v53 = vpop.permute.xlu1 %3035  ;;  %v4590_v55 = vsel %vm345_vm13, %v3032_v15, %v3033_v42 }
 0x34d   : > { %v4598_v48 = vpop.permute.xlu0 %3045 }
 0x34e   : > { %v4944_v59 = vunpack.i.l.bf16 %v4598_v48 }
 0x34f   : > { %3325 = vrot.lane.b32.xlu1 %v3324_v29, %s4983_s13  ;;  %3330 = vrot.lane.b32.xlu0 %v3329_v9, %s4983_s13 }
 0x350   : > { %v3041_v34 = vpop.permute.xlu1 %3040 }
 0x351   : > { %v3051_v13 = vpop.permute.xlu0 %3050  ;;  %v3043_v16 = vunpack.i.h.bf16 %v3041_v34  ;;  %v3042_v5 = vunpack.i.l.bf16 %v3041_v34 }
 0x352   : > { %v3052_v45 = vunpack.i.l.bf16 %v3051_v13  ;;  %v3053_v4 = vunpack.i.h.bf16 %v3051_v13 }
 0x353   : > { %2356 = vperm.xlu1 %2853, %v2353_v37   ;;  %v1495_v15 = vsel %vm396_vm11, %v3042_v5, %v3043_v16 }
 0x354   : > { %v3056_v28 = vpop.permute.xlu1 %3055 }
 0x355   : > { %v3076_v1 = vpop.permute.xlu0 %3075  ;;  %v3057_v58 = vunpack.i.l.bf16 %v3056_v28  ;;  %v3058_v6 = vunpack.i.h.bf16 %v3056_v28 }
 0x356   : > { %v3077_v49 = vunpack.i.l.bf16 %v3076_v1 }
 0x357   : > { %v1494_v9 = vsel %vm396_vm11, %v3057_v58, %v3042_v5 }
 0x358   : > { %v4608_v56 = vpop.permute.xlu1 %3060  ;;  %v4613_v7 = vsel %vm479_vm14, %v3077_v49, %v4944_v59  ;;  %v3037_v59 = vunpack.i.l.bf16 %v3036_v53 }
 0x359   : > { %4995 = vst [vmem:[#allocation14_spill] sm:$0xff] %v4613_v7  ;;  %v3086_v3 = vpop.permute.xlu0 %3085 }
 0x35a   : > { %v3088_v61 = vunpack.i.h.bf16 %v3086_v3  ;;  %v3087_v14 = vunpack.i.l.bf16 %v3086_v3  ;;  %v3038_v3 = vunpack.i.h.bf16 %v3036_v53 }
 0x35c   : > { %v4615_v42 = vpop.permute.xlu1 %3065  ;;  %v1497_v29 = vsel %vm396_vm11, %v3087_v14, %v3088_v61  ;;  %v1496_v37 = vsel %vm396_vm11, %v3058_v6, %v3087_v14  ;;  %v998_v58 = vsel %vm305_vm12, %v3037_v59, %v3038_v3 }
 0x35d   : > { %v4621_v34 = vpop.permute.xlu0 %3110  ;;  %v2749_v32 = vpack.c.bf16 %v1497_v29, %v1495_v15  ;;  %v2751_v25 = vpack.c.bf16 %v1496_v37, %v1494_v9 }
 0x35f   : > { %2750 = vmatprep.subr.bf16.mxu1 %v2749_v32  ;;  %v999_v32 = vsel %vm305_vm12, %v3038_v3, %v3052_v45 }
 0x360   : > { %2752 = vmatpush1.bf16.msra.mxu1 %v2751_v25  ;;  %v4623_v49 = vpop.permute.xlu1 %3070 }
 0x361   : > { %v4625_v28 = vpop.permute.xlu0 %3115 }
 0x364   : > { %v3081_v16 = vpop.permute.xlu1 %3080 }
 0x365   : > { %v3083_v61 = vunpack.i.h.bf16 %v3081_v16  ;;  %v3082_v36 = vunpack.i.l.bf16 %v3081_v16  ;;  %v4627_v5 = vpop.permute.xlu0 %3120 }
 0x367   : > { %v1000_v6 = vsel %vm305_vm12, %v3053_v4, %v3082_v36  ;;  %v1001_v25 = vsel %vm305_vm12, %v3082_v36, %v3083_v61  ;;  %v3078_v4 = vunpack.i.h.bf16 %v3076_v1 }
 0x368   : > { %v2703_v14 = vpack.c.bf16 %v1000_v6, %v998_v58  ;;  %v3091_v15 = vpop.permute.xlu1 %3090  ;;  %v2701_v29 = vpack.c.bf16 %v1001_v25, %v999_v32 }
 0x369   : > { %v4633_v9 = vpop.permute.xlu0 %3125  ;;  %v3093_v43 = vunpack.i.h.bf16 %v3091_v15 }
 0x36a   : > { %2702 = vmatprep.subr.bf16.mxu0 %v2701_v29 }
 0x36b   : > { %2704 = vmatpush1.bf16.msra.mxu0 %v2703_v14 }
 0x36c   : > { %v4635_v53 = vpop.permute.xlu1 %3095 }
 0x36d   : > { %v3131_v13 = vpop.permute.xlu0 %3130 }
 0x36e   : > { %v3133_v14 = vunpack.i.h.bf16 %v3131_v13  ;;  %v3132_v1 = vunpack.i.l.bf16 %v3131_v13 }
 0x370   : > { %v4637_v37 = vpop.permute.xlu1 %3100 }
 0x371   : > { %v4639_v16 = vpop.permute.xlu0 %3135 }
 0x374   : > { %v4641_v59 = vpop.permute.xlu1 %3105 }
 0x375   : > { %v4947_v45 = vunpack.i.l.bf16 %v4641_v59  ;;  %v3141_v36 = vpop.permute.xlu0 %3140 }
 0x376   : > { %v3142_v29 = vunpack.i.l.bf16 %v3141_v36  ;;  %v3143_v40 = vunpack.i.h.bf16 %v3141_v36  ;;  %v3113_v36 = vunpack.i.h.bf16 %v4621_v34 }
 0x377   : > { %v4647_v3 = vsel %vm479_vm14, %v3078_v4, %v4947_v45  ;;  %v1499_v4 = vsel %vm396_vm11, %v3132_v1, %v3133_v14  ;;  %v3063_v14 = vunpack.i.h.bf16 %v4608_v56 }
 0x378   : > { %4996 = vst [vmem:[#allocation11_spill] sm:$0xff] %v4647_v3  ;;  %v4649_v61 = vpop.permute.xlu1 %3155  ;;  %v1498_v58 = vsel %vm396_vm11, %v3142_v29, %v3132_v1  ;;  %v3092_v1 = vunpack.i.l.bf16 %v3091_v15 }
 0x379   : > { %v4653_v6 = vpop.permute.xlu0 %3145 }
 0x37c   : > { %v3166_v32 = vpop.permute.xlu1 %3165 }
 0x37d   : > { %v4655_v25 = vpop.permute.xlu0 %3150 }
 0x380   : > { %v3171_v50 = vpop.permute.xlu1 %3170 }
 0x381   : > { %v3173_v0 = vunpack.i.h.bf16 %v3171_v50  ;;  %v3172_v19 = vunpack.i.l.bf16 %v3171_v50  ;;  %v4657_v12 = vpop.permute.xlu0 %3160  ;;  %v3112_v50 = vunpack.i.l.bf16 %v4621_v34  ;;  %v4999_v34 = vpack.c.bf16 %v4552_v11, %v4544_v62 }
 0x382   : > { %v5000_v11 = vpack.c.bf16 %v4555_v47, %v4525_v54 }
 0x383   : > { %v1501_v45 = vsel %vm396_vm11, %v3172_v19, %v3173_v0  ;;  %v1500_v7 = vsel %vm396_vm11, %v3143_v40, %v3172_v19  ;;  %v3062_v0 = vunpack.i.l.bf16 %v4608_v56  ;;  %v4997_v19 = vpack.c.bf16 %v4211_v30, %v4206_v2  ;;  %vm5025_vm11 = vmmov %vm5020_vm9 }
 0x384   : > { %v4663_v3 = vpop.permute.xlu1 %3175  ;;  %v2753_v8 = vpack.c.bf16 %v1501_v45, %v1499_v4  ;;  %v2755_v27 = vpack.c.bf16 %v1500_v7, %v1498_v58  ;;  %v1673_v7 = vsel %vm426_vm0, %v3112_v50, %v3113_v36  ;;  %v3128_v45 = vunpack.i.h.bf16 %v4633_v9 }
 0x385   : > { %v4665_v13 = vpop.permute.xlu0 %3180  ;;  %v1671_v2 = vsel %vm426_vm0, %v3062_v0, %v3063_v14  ;;  %v1670_v30 = vsel %vm426_vm0, %v3092_v1, %v3062_v0  ;;  %v1672_v15 = vsel %vm426_vm0, %v3093_v43, %v3112_v50  ;;  %v3148_v58 = vunpack.i.h.bf16 %v4653_v6 }
 0x386   : > { %2754 = vmatprep.subr.bf16.mxu1 %v2753_v8  ;;  %v3127_v8 = vunpack.i.l.bf16 %v4633_v9  ;;  %v3147_v9 = vunpack.i.l.bf16 %v4653_v6  ;;  %v2765_v36 = vpack.c.bf16 %v1673_v7, %v1671_v2  ;;  %v2767_v14 = vpack.c.bf16 %v1672_v15, %v1670_v30 }
 0x387   : > { %2756 = vmatpush1.bf16.msra.mxu1 %v2755_v27  ;;  %v4998_v27 = vpack.c.bf16 %v4294_v10, %v4289_v24  ;;  %v3168_v24 = vunpack.i.h.bf16 %v3166_v32  ;;  %v3167_v10 = vunpack.i.l.bf16 %v3166_v32  ;;  %v3122_v30 = vunpack.i.l.bf16 %v4627_v5 }
 0x388   : > { %v4671_v29 = vpop.permute.xlu1 %3200  ;;  %2758 = vmatprep.subr.bf16.mxu1 %v4997_v19  ;;  %v1002_v46 = vsel %vm305_vm12, %v3127_v8, %v3128_v45 }
 0x389   : > { %v3186_v40 = vpop.permute.xlu0 %3185 }
 0x38a   : > { %v3187_v62 = vunpack.i.l.bf16 %v3186_v40  ;;  %v3188_v0 = vunpack.i.h.bf16 %v3186_v40 }
 0x38b   : > { %2760 = vmatpush1.bf16.msra.mxu1 %v4998_v27 }
 0x38c   : > { %v4682_v56 = vpop.permute.xlu1 %3205  ;;  %2762 = vmatprep.subr.bf16.mxu1 %v4999_v34  ;;  %v1674_v47 = vsel %vm426_vm0, %v3187_v62, %v3147_v9  ;;  %v3102_v62 = vunpack.i.l.bf16 %v4637_v37 }
 0x38d   : > { %v3191_v4 = vpop.permute.xlu0 %3190 }
 0x38e   : > { %v3193_v19 = vunpack.i.h.bf16 %v3191_v4  ;;  %v3192_v27 = vunpack.i.l.bf16 %v3191_v4  ;;  %v1675_v4 = vsel %vm426_vm0, %v3147_v9, %v3148_v58  ;;  %v5001_v58 = vpack.c.bf16 %v4272_v51, %v4269_v39 }
 0x38f   : > { %2764 = vmatpush1.bf16.msra.mxu1 %v5000_v11  ;;  %v3072_v9 = vunpack.i.l.bf16 %v4623_v49  ;;  %v5002_v11 = vpack.c.bf16 %v4334_v18, %v4331_v17  ;;  %v5003_v51 = vpack.c.bf16 %v4246_v31, %v4241_v22  ;;  %v5004_v17 = vpack.c.bf16 %v4590_v55, %v4575_v52 }
 0x390   : > { %v1004_v43 = vsel %vm305_vm12, %v3168_v24, %v3193_v19  ;;  %v3211_v50 = vpop.permute.xlu1 %3210  ;;  %2766 = vmatprep.subr.bf16.mxu1 %v2765_v36  ;;  %v1003_v6 = vsel %vm305_vm12, %v3128_v45, %v3192_v27  ;;  %v1005_v1 = vsel %vm305_vm12, %v3193_v19, %v3167_v10  ;;  %v3123_v45 = vunpack.i.h.bf16 %v4627_v5  ;;  %vm5026_vm12 = vmmov %vm5011_vm2 }
 0x391   : > { %v2707_v32 = vpack.c.bf16 %v1004_v43, %v1002_v46  ;;  %v3213_v7 = vunpack.i.h.bf16 %v3211_v50  ;;  %v3212_v34 = vunpack.i.l.bf16 %v3211_v50  ;;  %v4699_v2 = vpop.permute.xlu0 %3195  ;;  %v2705_v8 = vpack.c.bf16 %v1005_v1, %v1003_v6 }
 0x392   : > { %v3073_v10 = vunpack.i.h.bf16 %v4623_v49  ;;  %v3118_v19 = vunpack.i.h.bf16 %v4625_v28  ;;  %v3117_v5 = vunpack.i.l.bf16 %v4625_v28  ;;  %v3103_v27 = vunpack.i.h.bf16 %v4637_v37 }
 0x393   : > { %2706 = vmatprep.subr.bf16.mxu0 %v2705_v8  ;;  %2768 = vmatpush1.bf16.msra.mxu1 %v2767_v14  ;;  %v1677_v54 = vsel %vm426_vm0, %v3212_v34, %v3213_v7  ;;  %v1676_v40 = vsel %vm426_vm0, %v3188_v0, %v3212_v34  ;;  %v1177_v49 = vsel %vm345_vm13, %v3122_v30, %v3123_v45  ;;  %v3068_v14 = vunpack.i.h.bf16 %v4615_v42  ;;  %vm5032_vm0 = vmmov %vm5011_vm2 }
 0x394   : > { %2708 = vmatpush1.bf16.msra.mxu0 %v2707_v32  ;;  %v2769_v15 = vpack.c.bf16 %v1677_v54, %v1675_v4  ;;  %v2771_v36 = vpack.c.bf16 %v1676_v40, %v1674_v47  ;;  %v3067_v28 = vunpack.i.l.bf16 %v4615_v42  ;;  %v3098_v0 = vunpack.i.h.bf16 %v4635_v53  ;;  %vm5034_vm4 = vmmov %vm5032_vm0 }
 0x395   : > { %v4707_v46 = vpop.permute.xlu1 %3215  ;;  %v4709_v24 = vpop.permute.xlu0 %3220  ;;  %2710 = vmatprep.subr.bf16.mxu0 %v5001_v58  ;;  %v3097_v37 = vunpack.i.l.bf16 %v4635_v53  ;;  %v1175_v18 = vsel %vm345_vm13, %v3072_v9, %v3073_v10  ;;  %v1174_v22 = vsel %vm345_vm13, %v3102_v62, %v3072_v9  ;;  %v1176_v31 = vsel %vm345_vm13, %v3103_v27, %v3122_v30  ;;  %vm5037_vm1 = vmmov %vm5032_vm0 }
 0x396   : > { %2770 = vmatprep.subr.bf16.mxu1 %v2769_v15  ;;  %v5005_v50 = vpack.c.bf16 %v4315_v21, %v4310_v35  ;;  %v2717_v42 = vpack.c.bf16 %v1177_v49, %v1175_v18  ;;  %v1849_v6 = vsel %vm458_vm3, %v3117_v5, %v3118_v19  ;;  %v5006_v53 = vpack.c.bf16 %v4587_v63, %v4497_v26 }
 0x397   : > { %2772 = vmatpush1.bf16.msra.mxu1 %v2771_v36  ;;  %v5007_v52 = vpack.c.bf16 %v4581_v60, %v4578_v20  ;;  %v1847_v32 = vsel %vm458_vm3, %v3067_v28, %v3068_v14  ;;  %v1846_v35 = vsel %vm458_vm3, %v3097_v37, %v3067_v28  ;;  %v1848_v21 = vsel %vm458_vm3, %v3098_v0, %v3117_v5 }
 0x398   : > { %2712 = vmatpush1.bf16.msra.mxu0 %v5002_v11  ;;  %2774 = vmatprep.subr.bf16.mxu1 %v5003_v51  ;;  %v2719_v7 = vpack.c.bf16 %v1176_v31, %v1174_v22  ;;  %v3153_v34 = vunpack.i.h.bf16 %v4655_v25  ;;  %v3152_v26 = vunpack.i.l.bf16 %v4655_v25  ;;  %v2781_v63 = vpack.c.bf16 %v1849_v6, %v1847_v32 }
 0x399   : > { %v4723_v39 = vpop.permute.xlu1 %3225  ;;  %v4733_v43 = vpop.permute.xlu0 %3230  ;;  %2714 = vmatprep.subr.bf16.mxu0 %v5004_v17  ;;  %v3197_v8 = vunpack.i.l.bf16 %v4699_v2  ;;  %v5008_v20 = vpack.c.bf16 %v4584_v33, %v4564_v41  ;;  %v3048_v60 = vunpack.i.h.bf16 %v4598_v48  ;;  %v3138_v4 = vunpack.i.h.bf16 %v4639_v16 }
 0x39a   : > { %v3137_v54 = vunpack.i.l.bf16 %v4639_v16  ;;  %v2783_v40 = vpack.c.bf16 %v1848_v21, %v1846_v35  ;;  %v3108_v45 = vunpack.i.h.bf16 %v4641_v59  ;;  %v3198_v25 = vunpack.i.h.bf16 %v4699_v2 }
 0x39b   : > { %2776 = vmatpush1.bf16.msra.mxu1 %v5005_v50  ;;  %v3178_v41 = vunpack.i.h.bf16 %v4663_v3  ;;  %v3177_v33 = vunpack.i.l.bf16 %v4663_v3  ;;  %v3183_v58 = vunpack.i.h.bf16 %v4665_v13  ;;  %v1851_v16 = vsel %vm458_vm3, %v3152_v26, %v3153_v34 }
 0x39c   : > { %2716 = vmatpush1.bf16.msra.mxu0 %v5006_v53  ;;  %2778 = vmatprep.subr.bf16.mxu1 %v5007_v52  ;;  %v3182_v10 = vunpack.i.l.bf16 %v4665_v13  ;;  %v1850_v19 = vsel %vm458_vm3, %v3197_v8, %v3152_v26  ;;  %v3158_v5 = vunpack.i.h.bf16 %v4649_v61  ;;  %v3157_v27 = vunpack.i.l.bf16 %v4649_v61 }
 0x39d   : > { %v4748_v1 = vpop.permute.xlu1 %3235  ;;  %v4753_v55 = vpop.permute.xlu0 %3240  ;;  %2718 = vmatprep.subr.bf16.mxu0 %v2717_v42  ;;  %v3162_v51 = vunpack.i.l.bf16 %v4657_v12  ;;  %v5009_v13 = vunpack.i.l.bf16 %v4641_v59  ;;  %v3208_v28 = vunpack.i.h.bf16 %v4682_v56  ;;  %v3207_v0 = vunpack.i.l.bf16 %v4682_v56 }
 0x39e   : > { %v5010_v61 = vunpack.i.l.bf16 %v4598_v48  ;;  %v4795_v17 = vsel %vm5011_vm2, %v3177_v33, %v3178_v41  ;;  %v4798_v18 = vsel %vm5012_vm6, %v3182_v10, %v3183_v58  ;;  %v5013_v59 = vpack.c.bf16 %v4356_v38, %v4353_v23  ;;  %v5022_v41 = vld [vmem:[#allocation12_spill] sm:$0xff]  ;;  %v5023_v58 = vld [vmem:[#allocation9_spill] sm:$0xff] }
 0x39f   : > { %2780 = vmatpush1.bf16.msra.mxu1 %v5008_v20  ;;  %v1993_v14 = vsel %vm479_vm14, %v5009_v13, %v3108_v45  ;;  %v1179_v56 = vsel %vm345_vm13, %v3157_v27, %v3158_v5  ;;  %v1995_v50 = vsel %vm479_vm14, %v3137_v54, %v3138_v4  ;;  %v3163_v48 = vunpack.i.h.bf16 %v4657_v12 }
 0x3a0   : > { %2720 = vmatpush1.bf16.msra.mxu0 %v2719_v7  ;;  %2782 = vmatprep.subr.bf16.mxu1 %v2781_v63  ;;  %v1991_v37 = vsel %vm479_vm14, %v5010_v61, %v3048_v60  ;;  %v3203_v42 = vunpack.i.h.bf16 %v4671_v29  ;;  %v3202_v6 = vunpack.i.l.bf16 %v4671_v29  ;;  %v4813_v52 = vsel %vm479_vm14, %v3162_v51, %v3137_v54  ;;  %v5015_v60 = vld [vmem:[#allocation13_spill] sm:$0xff] }
 0x3a1   : > { %v3246_v47 = vpop.permute.xlu1 %3245  ;;  %v4769_v36 = vpop.permute.xlu0 %3255  ;;  %v2797_v31 = vpack.c.bf16 %v1993_v14, %v1991_v37  ;;  %v3218_v32 = vunpack.i.h.bf16 %v4707_v46  ;;  %v3217_v23 = vunpack.i.l.bf16 %v4707_v46  ;;  %v2725_v38 = vpack.c.bf16 %v4798_v18, %v4795_v17  ;;  %v5028_v37 = vld [vmem:[#allocation11_spill] sm:$0xff]  ;;  %v5029_v17 = vld [vmem:[#allocation14_spill] sm:$0xff] }
 0x3a2   : > { %v3248_v30 = vunpack.i.h.bf16 %v3246_v47  ;;  %v3247_v15 = vunpack.i.l.bf16 %v3246_v47  ;;  %v1997_v35 = vsel %vm479_vm14, %v3207_v0, %v3208_v28  ;;  %v3228_v12 = vunpack.i.h.bf16 %v4723_v39 }
 0x3a3   : > { %2784 = vmatpush1.bf16.msra.mxu1 %v2783_v40  ;;  %v3227_v21 = vunpack.i.l.bf16 %v4723_v39  ;;  %v3233_v29 = vunpack.i.h.bf16 %v4733_v43  ;;  %v3232_v7 = vunpack.i.l.bf16 %v4733_v43  ;;  %v5014_v34 = vpack.c.bf16 %v4359_v44, %v4167_v57  ;;  %v5016_v39 = vld [vmem:[#allocation10_spill] sm:$0xff] }
 0x3a4   : > { %v1853_v9 = vsel %vm458_vm3, %v3247_v15, %v3248_v30  ;;  %v1852_v2 = vsel %vm458_vm3, %v3198_v25, %v3247_v15  ;;  %v3238_v26 = vunpack.i.h.bf16 %v4748_v1  ;;  %v3237_v46 = vunpack.i.l.bf16 %v4748_v1  ;;  %vm5033_vm3 = vmmov %vm5032_vm0 }
 0x3a5   : > { %v4781_v62 = vpop.permute.xlu1 %3250  ;;  %v2785_v3 = vpack.c.bf16 %v1853_v9, %v1851_v16  ;;  %v2787_v11 = vpack.c.bf16 %v1852_v2, %v1850_v19  ;;  %v4784_v49 = vpop.permute.xlu0 %3265  ;;  %v3243_v63 = vunpack.i.h.bf16 %v4753_v55  ;;  %v3242_v8 = vunpack.i.l.bf16 %v4753_v55 }
 0x3a6   : > { %v5017_v4 = vpack.c.bf16 %v5015_v60, %v5016_v39  ;;  %v1178_v43 = vsel %vm345_vm13, %v3202_v6, %v3157_v27  ;;  %v3222_v54 = vunpack.i.l.bf16 %v4709_v24  ;;  %v2801_v44 = vpack.c.bf16 %v1997_v35, %v1995_v50 }
 0x3a7   : > { %2786 = vmatprep.subr.bf16.mxu1 %v2785_v3  ;;  %v1996_v47 = vsel %vm479_vm14, %v3163_v48, %v3207_v0  ;;  %v1342_v1 = vsel %vm5018_vm7, %v3217_v23, %v3177_v33  ;;  %v3223_v40 = vunpack.i.h.bf16 %v4709_v24  ;;  %v1344_v25 = vsel %vm5019_vm8, %v3218_v32, %v3182_v10  ;;  %vm5027_vm14 = vmmov %vm5011_vm2 }
 0x3a8   : > { %2788 = vmatpush1.bf16.msra.mxu1 %v2787_v11  ;;  %v4843_v30 = vsel %vm5020_vm9, %v3233_v29, %v3227_v21  ;;  %v4846_v15 = vsel %vm5021_vm10, %v3232_v7, %v3222_v54  ;;  %v5024_v16 = vpack.c.bf16 %v5022_v41, %v5023_v58  ;;  %v2161_v9 = vsel %vm5025_vm11, %v3227_v21, %v3228_v12  ;;  %vm5038_vm2 = vmmov %vm5035_vm5 }
 0x3a9   : > { %v4800_v22 = vpop.permute.xlu1 %3260  ;;  %2790 = vmatprep.subr.bf16.mxu1 %v5013_v59  ;;  %v4810_v53 = vpop.permute.xlu0 %3275  ;;  %v1347_v10 = vsel %vm5026_vm12, %v3237_v46, %v3238_v26  ;;  %v1349_v2 = vsel %vm5027_vm14, %v3242_v8, %v3243_v63  ;;  %v3253_v5 = vunpack.i.h.bf16 %v4781_v62  ;;  %v3252_v27 = vunpack.i.l.bf16 %v4781_v62  ;;  %vm5039_vm6 = vmmov %vm5038_vm2 }
 0x3aa   : > { %v3263_v13 = vunpack.i.h.bf16 %v4800_v22  ;;  %v3262_v14 = vunpack.i.l.bf16 %v4800_v22  ;;  %v2727_v61 = vpack.c.bf16 %v1344_v25, %v1342_v1  ;;  %v5030_v18 = vpack.c.bf16 %v5028_v37, %v5029_v17  ;;  %vm5041_vm7 = vmmov %vm5032_vm0 }
 0x3ab   : > { %v2803_v62 = vpack.c.bf16 %v1996_v47, %v4813_v52  ;;  %v3257_v22 = vunpack.i.l.bf16 %v4769_v36  ;;  %v3278_v6 = vunpack.i.h.bf16 %v4810_v53  ;;  %v3277_v32 = vunpack.i.l.bf16 %v4810_v53  ;;  %vm5042_vm8 = vmmov %vm5032_vm0 }
 0x3ac   : > { %2792 = vmatpush1.bf16.msra.mxu1 %v5014_v34  ;;  %v2729_v23 = vpack.c.bf16 %v1349_v2, %v1347_v10  ;;  %v1346_v35 = vsel %vm5032_vm0, %v3252_v27, %v3237_v46  ;;  %v1348_v12 = vsel %vm5033_vm3, %v3253_v5, %v3242_v8  ;;  %v3268_v63 = vunpack.i.h.bf16 %v4784_v49  ;;  %vm5045_vm10 = vmmov %vm5038_vm2 }
 0x3ad   : > { %v4831_v20 = vpop.permute.xlu1 %3270  ;;  %2794 = vmatprep.subr.bf16.mxu1 %v5017_v4  ;;  %v3286_v57 = vpop.permute.xlu0 %3285  ;;  %v2731_v60 = vpack.c.bf16 %v1348_v12, %v1346_v35  ;;  %vm5046_vm11 = vmmov %vm5038_vm2 }
 0x3ae   : > { %v3288_v45 = vunpack.i.h.bf16 %v3286_v57  ;;  %v3287_v55 = vunpack.i.l.bf16 %v3286_v57  ;;  %v3273_v28 = vunpack.i.h.bf16 %v4831_v20  ;;  %v3272_v0 = vunpack.i.l.bf16 %v4831_v20  ;;  %v5040_v57 = vld [vmem:[#allocation8_spill] sm:$0xff]  ;;  %vm5047_vm12 = vmmov %vm5038_vm2 }
 0x3af   : > { %vm5048_vm14 = vmmov %vm5032_vm0 }
 0x3b0   : > { %2796 = vmatpush1.bf16.msra.mxu1 %v5024_v16  ;;  %v1180_v33 = vsel %vm345_vm13, %v3203_v42, %v3287_v55  ;;  %v1181_v24 = vsel %vm345_vm13, %v3287_v55, %v3288_v45  ;;  %vm5031_vm13 = vmmov %vm5020_vm9  ;;  %v3267_v42 = vunpack.i.l.bf16 %v4784_v49  ;;  %v1351_v21 = vsel %vm5034_vm4, %v3272_v0, %v3273_v28 }
 0x3b1   : > { %v3281_v19 = vpop.permute.xlu1 %3280  ;;  %2798 = vmatprep.subr.bf16.mxu1 %v2797_v31  ;;  %v2723_v3 = vpack.c.bf16 %v1180_v33, %v1178_v43  ;;  %v4858_v11 = vpop.permute.xlu0 %3290  ;;  %v2721_v51 = vpack.c.bf16 %v1181_v24, %v1179_v56  ;;  %v2159_v59 = vsel %vm5031_vm13, %v3222_v54, %v3223_v40  ;;  %v2807_v31 = vpack.c.bf16 %v4843_v30, %v4846_v15  ;;  %vm5043_vm9 = vmmov %vm5038_vm2 }
 0x3b2   : > { %v3258_v56 = vunpack.i.h.bf16 %v4769_v36  ;;  %v2805_v48 = vpack.c.bf16 %v2161_v9, %v2159_v59  ;;  %v2165_v36 = vsel %vm5035_vm5, %v3262_v14, %v3263_v13  ;;  %v3283_v29 = vunpack.i.h.bf16 %v3281_v19  ;;  %vm5049_vm13 = vmmov %vm5032_vm0 }
 0x3b3   : > { %2722 = vmatprep.subr.bf16.mxu0 %v2721_v51  ;;  %v3282_v7 = vunpack.i.l.bf16 %v3281_v19  ;;  %v3293_v8 = vunpack.i.h.bf16 %v4858_v11  ;;  %v3292_v39 = vunpack.i.l.bf16 %v4858_v11  ;;  %v1353_v43 = vsel %vm5037_vm1, %v3277_v32, %v3278_v6  ;;  %vm5050_vm3 = vmmov %vm5032_vm0 }
 0x3b4   : > { %2800 = vmatpush1.bf16.msra.mxu1 %v5030_v18  ;;  %2724 = vmatpush1.bf16.msra.mxu0 %v2723_v3  ;;  %v2163_v46 = vsel %vm5036_vm15, %v3257_v22, %v3258_v56  ;;  %v2162_v54 = vsel %vm5038_vm2, %v3267_v42, %v3257_v22  ;;  %v2164_v49 = vsel %vm5039_vm6, %v3268_v63, %v3262_v14  ;;  %v5044_v55 = vmov 0.0   ;;  %vm5051_vm4 = vmmov %vm5038_vm2 }
 0x3b5   : > { %v3296_v50 = vpop.permute.xlu1 %3295  ;;  %2802 = vmatprep.subr.bf16.mxu1 %v2801_v44  ;;  %v3301_v52 = vpop.permute.xlu0 %3300  ;;  %2726 = vmatprep.subr.bf16.mxu0 %v2725_v38  ;;  %v2733_v44 = vpack.c.bf16 %v1353_v43, %v1351_v21  ;;  %v2809_v47 = vpack.c.bf16 %v2165_v36, %v2163_v46  ;;  %v1350_v1 = vsel %vm5041_vm7, %v3282_v7, %v3272_v0  ;;  %vm5052_vm5 = vmmov %vm5038_vm2 }
 0x3b6   : > { %v3298_v34 = vunpack.i.h.bf16 %v3296_v50  ;;  %v3297_v26 = vunpack.i.l.bf16 %v3296_v50  ;;  %v3303_v20 = vunpack.i.h.bf16 %v3301_v52  ;;  %v3302_v53 = vunpack.i.l.bf16 %v3301_v52  ;;  %vm5053_vm15 = vmmov %vm5038_vm2  ;;  %v5055_v52 = vld [vmem:[#allocation15_spill] sm:$0xff] }
 0x3b7   : > { %v1352_v40 = vsel %vm5042_vm8, %v3283_v29, %v3277_v32  ;;  %v2811_v16 = vpack.c.bf16 %v2164_v49, %v2162_v54  ;;  %v2167_v24 = vsel %vm5047_vm12, %v3292_v39, %v3293_v8  ;;  %vm5054_vm1 = vmmov %vm5038_vm2  ;;  %vm2366_vm2 = vcmask 523264  }
 0x3b8   : > { %2804 = vmatpush1.bf16.msra.mxu1 %v2803_v62  ;;  %2728 = vmatpush1.bf16.msra.mxu0 %v2727_v61  ;;  %v2169_v45 = vsel %vm5043_vm9, %v3297_v26, %v3298_v34  ;;  %v2168_v25 = vsel %vm5045_vm10, %v3303_v20, %v3297_v26  ;;  %v2166_v30 = vsel %vm5046_vm11, %v3302_v53, %v3292_v39 }
 0x3b9   : > { %v3306_v38 = vpop.permute.xlu1 %3305  ;;  %2806 = vmatprep.subr.bf16.mxu1 %v2805_v48  ;;  %v3316_v4 = vpop.permute.xlu0 %3315  ;;  %2730 = vmatprep.subr.bf16.mxu0 %v2729_v23  ;;  %v2735_v10 = vpack.c.bf16 %v1352_v40, %v1350_v1  ;;  %v2813_v27 = vpack.c.bf16 %v2169_v45, %v2167_v24  ;;  %v2815_v3 = vpack.c.bf16 %v2168_v25, %v2166_v30  ;;  %v2208_v23 = vld [vmem:[%s4919_s4 + $0x10] sm:$0x7] }
 0x3ba   : > { %v3308_v15 = vunpack.i.h.bf16 %v3306_v38  ;;  %v3307_v41 = vunpack.i.l.bf16 %v3306_v38  ;;  %v3318_v11 = vunpack.i.h.bf16 %v3316_v4  ;;  %v3317_v51 = vunpack.i.l.bf16 %v3316_v4 }
 0x3bb   : > { %2505 = vmatmul.mubr.f32.vlgmr.msra.gmra.mrb[0].mxu1 %v5040_v57 }
 0x3bc   : > { %2808 = vmatpush1.bf16.msra.mxu1 %v2807_v31  ;;  %2575 = vmatprep.mubr.f32.mxu1 %v5044_v55  ;;  %v1355_v0 = vsel %vm5032_vm0, %v3307_v41, %v3308_v15  ;;  %v2171_v22 = vsel %vm5051_vm4, %v3317_v51, %v3318_v11 }
 0x3bd   : > { %2732 = vmatpush1.bf16.msra.mxu0 %v2731_v60  ;;  %v3311_v58 = vpop.permute.xlu1 %3310  ;;  %2810 = vmatprep.subr.bf16.mxu1 %v2809_v47  ;;  %v3321_v19 = vpop.permute.xlu0 %3320 }
 0x3be   : > { %v3313_v9 = vunpack.i.h.bf16 %v3311_v58  ;;  %v3312_v33 = vunpack.i.l.bf16 %v3311_v58  ;;  %2734 = vmatprep.subr.bf16.mxu0 %v2733_v44  ;;  %v3323_v2 = vunpack.i.h.bf16 %v3321_v19  ;;  %v3322_v5 = vunpack.i.l.bf16 %v3321_v19 }
 0x3c0   : > { %v1354_v13 = vsel %vm5048_vm14, %v3312_v33, %v3307_v41  ;;  %2812 = vmatpush1.bf16.msra.mxu1 %v2811_v16  ;;  %v1356_v14 = vsel %vm5049_vm13, %v3313_v9, %v3322_v5  ;;  %v1357_v61 = vsel %vm5050_vm3, %v3322_v5, %v3323_v2 }
 0x3c1   : > { %2736 = vmatpush1.bf16.msra.mxu0 %v2735_v10  ;;  %v3326_v28 = vpop.permute.xlu1 %3325  ;;  %2814 = vmatprep.subr.bf16.mxu1 %v2813_v27  ;;  %v2739_v37 = vpack.c.bf16 %v1356_v14, %v1354_v13  ;;  %v3331_v62 = vpop.permute.xlu0 %3330  ;;  %v2737_v59 = vpack.c.bf16 %v1357_v61, %v1355_v0 }
 0x3c2   : > { %v3328_v17 = vunpack.i.h.bf16 %v3326_v28  ;;  %v3327_v18 = vunpack.i.l.bf16 %v3326_v28  ;;  %v3333_v31 = vunpack.i.h.bf16 %v3331_v62  ;;  %v3332_v56 = vunpack.i.l.bf16 %v3331_v62 }
 0x3c3   : > { %2738 = vmatprep.subr.bf16.mxu0 %v2737_v59 }
 0x3c4   : > { %2816 = vmatpush1.bf16.msra.mxu1 %v2815_v3  ;;  %v2173_v50 = vsel %vm5052_vm5, %v3327_v18, %v3328_v17  ;;  %v2172_v48 = vsel %vm5053_vm15, %v3333_v31, %v3327_v18  ;;  %v2170_v42 = vsel %vm5054_vm1, %v3332_v56, %v3317_v51 }
 0x3c5   : > { %2740 = vmatpush1.bf16.msra.mxu0 %v2739_v37  ;;  %v2817_v6 = vpack.c.bf16 %v2173_v50, %v2171_v22  ;;  %v2819_v32 = vpack.c.bf16 %v2172_v48, %v2170_v42 }
 0x3c7   : > { %2818 = vmatprep.subr.bf16.mxu1 %v2817_v6 }
 0x3c8   : > { %2434 = vmatmul.mubr.f32.vlgmr.msra.gmra.mrb[16].mxu0 %v5055_v52  ;;  %2820 = vmatpush1.bf16.msra.mxu1 %v2819_v32 }
 0x3cb   : > { %2662 = vmatmul.mubr.msk.f32.vlgmr.msra.gmra.mrb[0].mxu1 %vm2366_vm2, %v2208_v23 }
 0x3d2   : > { %v2357_v35 = vpop.permute.xlu1 %2356 }
 0x49b   : > { %v2435_v12 = vpop.f32.mrb[16].mxu0 }
 0x49c   : > { %v2436_v21 = vadd.f32 %v2435_v12, %v2357_v35  ;;  %v2437_v36 = vpop.f32.mrb[17].mxu0 }
 0x49d   : > { %v2438_v29 = vadd.f32 %v2437_v36, %v2357_v35 }
 0x49e   : > { %v2577_v7 = vpop.f32.mrb[0].mxu1 }
 0x49f   : > { %v2822_v34 = vadd.f32 %v2577_v7, %v2436_v21  ;;  %v2579_v26 = vpop.f32.mrb[1].mxu1 }
 0x4a0   : > { %v2824_v63 = vadd.f32 %v2579_v26, %v2438_v29 }
 0x4a2   : > { %v2584_v20 = vcombine.low %v2822_v34, %v2824_v63 }
 0x4a4   : > { %2586 = vst [vmem:[%s251_s20] sm:$0x77] %v2584_v20 }
 0x4a5 PF: > { %s16_s21 = sadd.s32 1, %s3346_s21  }
 0x4a6   : > { %p13_p4 = scmp.ge.s32.totalorder %s16_s21, 4  }
 0x4a8   :  { %15 = sbr.rel (!%p13_p4) target bundleno = 1 (0x1), region = 75 }

</bundles_post_ra>
